<compile_context>
chip_gen: v5e
topology: v5e:2x2
jax: 0.10.0
libtpu: 0.0.40
codegen_flags: <defaults>
</compile_context>

<pallas_src>
import jax
import jax.numpy as jnp
from jax.experimental import pallas as pl
from jax.experimental.pallas import tpu as pltpu


OUT_ROWS = 8  # sublane-aligned output block height (row 0 holds the logits)


def _round_up(x, m):
    return (x + m - 1) // m * m


def masked_net_kernel(x_ref, wconv_ref, bconv_ref, wfc_ref, bfc_ref, out_ref):
    # x_ref    : (H+2, W+2, Cin)     bf16  one padded image (Cin unpadded)
    # wconv_ref: (KP, COUT_P)        bf16  im2col conv weight (KP = 9*Cin padded)
    # bconv_ref: (1, COUT_P)         f32
    # wfc_ref  : (COUT_P, NCLS_P)    f32   classifier weight with 1/(H*W) folded in
    # bfc_ref  : (1, NCLS_P)         f32
    # out_ref  : (OUT_ROWS, NCLS_P)  f32   lane-dense logits block for this image
    Hp, Wp, Cin = x_ref.shape
    H, W = Hp - 2, Wp - 2
    KP = wconv_ref.shape[0]
    K = 9 * Cin

    xt = x_ref[...]                                   # bf16, stays bf16

    # im2col: pack (kh, kw, c) into the contraction axis.  Zero lanes K..KP-1
    # pair with zero weight rows, so the padded contraction is exact.
    cols = []
    for kh in range(3):
        for kw in range(3):
            cols.append(xt[kh:kh + H, kw:kw + W, :].reshape(H * W, Cin))
    if KP > K:
        cols.append(jnp.zeros((H * W, KP - K), xt.dtype))
    patches = jnp.concatenate(cols, axis=-1)          # (H*W, KP) bf16

    # Single lane-dense MXU matmul for the whole 3x3 conv, f32 accumulation.
    acc = jnp.dot(patches, wconv_ref[...], preferred_element_type=jnp.float32)
    acc = acc + bconv_ref[...]                        # bias, broadcast (1, COUT_P)
    act = acc * jax.nn.sigmoid(acc)                   # SiLU / Swish, f32

    # Global average pool: plain sum here, the 1/(H*W) scale is folded into wfc.
    pooled = jnp.sum(act, axis=0, keepdims=True)      # (1, COUT_P) f32
    logits = jnp.dot(pooled, wfc_ref[...],
                     preferred_element_type=jnp.float32) + bfc_ref[...]
    out_ref[...] = jnp.broadcast_to(logits, out_ref.shape)


def masked_net_forward(x_nchw, params):
    """Forward pass of MaskedNet (== wrapped net forward). x_nchw: (N, Cin, H, W)."""
    wconv_oihw, bconv, wfc, bfc = params              # PyTorch-shaped parameters
    N, Cin, H, W = x_nchw.shape
    Cout = wconv_oihw.shape[0]
    ncls = wfc.shape[0]

    COUT_P = _round_up(Cout, 128)
    NCLS_P = _round_up(ncls, 128)
    K = 9 * Cin
    KP = _round_up(K, 128)
    Hp, Wp = H + 2, W + 2

    # NCHW -> NHWC, spatial 'same' pad only; Cin stays unpadded in HBM; bf16.
    x_nhwc = jnp.transpose(x_nchw, (0, 2, 3, 1))
    xpad = jnp.pad(x_nhwc, ((0, 0), (1, 1), (1, 1), (0, 0))).astype(jnp.bfloat16)

    # Conv weight: OIHW -> HWIO -> im2col (9*Cin, Cout), zero-pad to (KP, COUT_P).
    # Row order (kh, kw, c) matches the patch concatenation order above.
    w_hwio = jnp.transpose(wconv_oihw, (2, 3, 1, 0))           # (3, 3, Cin, Cout)
    w_conv = (jnp.zeros((KP, COUT_P), jnp.float32)
              .at[:K, :Cout].set(w_hwio.reshape(K, Cout))
              .astype(jnp.bfloat16))
    b_conv = jnp.zeros((1, COUT_P), jnp.float32).at[0, :Cout].set(bconv)

    # Classifier: transpose, fold the 1/(H*W) pooling scale, pad to 128 lanes.
    w_fc = (jnp.zeros((COUT_P, NCLS_P), jnp.float32)
            .at[:Cout, :ncls].set(wfc.T / float(H * W)))
    b_fc = jnp.zeros((1, NCLS_P), jnp.float32).at[0, :ncls].set(bfc)

    flops = 2 * N * H * W * KP * COUT_P + 2 * N * COUT_P * NCLS_P
    transcendentals = N * H * W * COUT_P
    bytes_accessed = (xpad.size * xpad.dtype.itemsize
                      + w_conv.size * w_conv.dtype.itemsize
                      + b_conv.size * 4 + w_fc.size * 4 + b_fc.size * 4
                      + N * OUT_ROWS * NCLS_P * 4)

    out = pl.pallas_call(
        masked_net_kernel,
        out_shape=jax.ShapeDtypeStruct((N, OUT_ROWS, NCLS_P), jnp.float32),
        grid_spec=pltpu.PrefetchScalarGridSpec(
            num_scalar_prefetch=0,
            grid=(N,),
            in_specs=[
                # whole padded image per batch element; Cin==full dim is a
                # legal last block dim, so no lane padding is needed in HBM.
                pl.BlockSpec((None, Hp, Wp, Cin), lambda n: (n, 0, 0, 0)),
                # weights / biases: constant index_map -> resident, no re-DMA
                pl.BlockSpec((KP, COUT_P), lambda n: (0, 0)),
                pl.BlockSpec((1, COUT_P), lambda n: (0, 0)),
                pl.BlockSpec((COUT_P, NCLS_P), lambda n: (0, 0)),
                pl.BlockSpec((1, NCLS_P), lambda n: (0, 0)),
            ],
            out_specs=pl.BlockSpec((None, OUT_ROWS, NCLS_P),
                                   lambda n: (n, 0, 0)),
        ),
        compiler_params=pltpu.CompilerParams(
            dimension_semantics=("parallel",),        # batch across TensorCores
            vmem_limit_bytes=32 * 1024 * 1024,        # safe on v5e/v6e/v7x
        ),
        cost_estimate=pl.CostEstimate(flops=flops,
                                      transcendentals=transcendentals,
                                      bytes_accessed=bytes_accessed),
    )(xpad, w_conv, b_conv, w_fc, b_fc)

    return out[:, 0, :ncls]


def reference_forward(x_nchw, params, matmul_dtype=jnp.float32):
    """Pure-JAX reference (mirrors the PyTorch net).  With matmul_dtype=bf16 it
    uses the same bf16-operand / f32-accumulate numerics as the kernel."""
    wconv_oihw, bconv, wfc, bfc = params
    y = jax.lax.conv_general_dilated(
        x_nchw.astype(matmul_dtype), wconv_oihw.astype(matmul_dtype),
        window_strides=(1, 1), padding="SAME",
        dimension_numbers=("NCHW", "OIHW", "NCHW"),
        preferred_element_type=jnp.float32)
    y = y + bconv[None, :, None, None]
    y = y * jax.nn.sigmoid(y)                          # SiLU
    pooled = jnp.mean(y, axis=(2, 3))                  # (N, Cout)
    return pooled @ wfc.T + bfc[None, :]


if __name__ == "__main__":
    key = jax.random.PRNGKey(0)
    kx, kw, kb, kfw, kfb = jax.random.split(key, 5)

    # Small shapes consistent with the forward: batch=2, Cin=4, spatial=16x16.
    N, Cin, H, W = 2, 4, 16, 16
    Cout, ncls = 8, 10

    x = jax.random.normal(kx, (N, Cin, H, W), jnp.float32)

    # Deterministic synthetic parameters (PyTorch shapes: OIHW conv, (out,in) linear).
    wconv = 0.1 * jax.random.normal(kw, (Cout, Cin, 3, 3), jnp.float32)
    bconv = 0.1 * jax.random.normal(kb, (Cout,), jnp.float32)
    wfc = 0.1 * jax.random.normal(kfw, (ncls, Cout), jnp.float32)
    bfc = 0.1 * jax.random.normal(kfb, (ncls,), jnp.float32)
    params = (wconv, bconv, wfc, bfc)

    # MaskedNet's maskers: one mask per named parameter, used only inside
    # backward gradient hooks -> forward-inert.
    # TODO(synk): gradient-masking hooks (grad * mask) belong in a custom VJP,
    # not in this forward-only Pallas kernel.
    masks = {
        "net.conv.weight": jnp.ones_like(wconv),
        "net.conv.bias": jnp.ones_like(bconv),
        "net.fc.weight": jnp.ones_like(wfc),
        "net.fc.bias": jnp.ones_like(bfc),
    }
    del masks  # forward-inert

    out = masked_net_forward(x, params)
    out = jax.block_until_ready(out)
    assert out.shape == (N, ncls)

    # Tight check against a reference that uses the same bf16-operand /
    # f32-accumulate numerics as the kernel.
    ref_bf16 = reference_forward(x, params, matmul_dtype=jnp.bfloat16)
    err_bf16 = jnp.max(jnp.abs(out - ref_bf16))
    assert jnp.allclose(out, ref_bf16, atol=1e-3, rtol=1e-3), (
        f"max abs err vs bf16-matched reference: {err_bf16}")

    # Loose sanity check against the full-f32 PyTorch-equivalent math
    # (bf16 MXU operands bound the difference).
    ref_f32 = reference_forward(x, params, matmul_dtype=jnp.float32)
    err_f32 = jnp.max(jnp.abs(out - ref_f32))
    assert jnp.allclose(out, ref_f32, atol=1e-2, rtol=1e-2), (
        f"max abs err vs f32 reference: {err_f32}")

    print("KERNEL_OK")
</pallas_src>

<mosaic_0001>
module attributes {stable_mosaic.version = 11 : i64} {
  func.func @masked_net_kernel(%arg0: i32, %arg1: memref<1x18x18x4xbf16, #tpu.memory_space<vmem>>, %arg2: memref<128x128xbf16, #tpu.memory_space<vmem>>, %arg3: memref<1x128xf32, #tpu.memory_space<vmem>>, %arg4: memref<128x128xf32, #tpu.memory_space<vmem>>, %arg5: memref<1x128xf32, #tpu.memory_space<vmem>>, %arg6: memref<1x8x128xf32, #tpu.memory_space<vmem>>) attributes {dimension_semantics = [#tpu.dimension_semantics<parallel>], iteration_bounds = array<i64: 2>, scalar_prefetch = 0 : i64, scratch_operands = 0 : i64, tpu.core_type = #tpu.core_type<tc>, window_params = [{transform_indices = @transform_0, window_bounds = array<i64: 1, 18, 18, 4>}, {pipeline_mode = #tpu.pipeline_mode<synchronous>, transform_indices = @transform_1, window_bounds = array<i64: 128, 128>}, {pipeline_mode = #tpu.pipeline_mode<synchronous>, transform_indices = @transform_2, window_bounds = array<i64: 1, 128>}, {pipeline_mode = #tpu.pipeline_mode<synchronous>, transform_indices = @transform_3, window_bounds = array<i64: 128, 128>}, {pipeline_mode = #tpu.pipeline_mode<synchronous>, transform_indices = @transform_4, window_bounds = array<i64: 1, 128>}, {transform_indices = @transform_5, window_bounds = array<i64: 1, 8, 128>}]} {
    %c0 = arith.constant 0 : index
    %c0_0 = arith.constant 0 : index
    %c0_1 = arith.constant 0 : index
    %c0_2 = arith.constant 0 : index
    %0 = vector.load %arg1[%c0, %c0_0, %c0_1, %c0_2] : memref<1x18x18x4xbf16, #tpu.memory_space<vmem>>, vector<1x18x18x4xbf16>
    %1 = vector.shape_cast %0 : vector<1x18x18x4xbf16> to vector<18x18x4xbf16>
    %2 = vector.extract_strided_slice %1 {offsets = [0, 0, 0], sizes = [16, 16, 4], strides = [1, 1, 1]} : vector<18x18x4xbf16> to vector<16x16x4xbf16>
    %3 = vector.shape_cast %2 : vector<16x16x4xbf16> to vector<256x4xbf16>
    %4 = vector.extract_strided_slice %1 {offsets = [0, 1, 0], sizes = [16, 16, 4], strides = [1, 1, 1]} : vector<18x18x4xbf16> to vector<16x16x4xbf16>
    %5 = vector.shape_cast %4 : vector<16x16x4xbf16> to vector<256x4xbf16>
    %6 = vector.extract_strided_slice %1 {offsets = [0, 2, 0], sizes = [16, 16, 4], strides = [1, 1, 1]} : vector<18x18x4xbf16> to vector<16x16x4xbf16>
    %7 = vector.shape_cast %6 : vector<16x16x4xbf16> to vector<256x4xbf16>
    %8 = vector.extract_strided_slice %1 {offsets = [1, 0, 0], sizes = [16, 16, 4], strides = [1, 1, 1]} : vector<18x18x4xbf16> to vector<16x16x4xbf16>
    %9 = vector.shape_cast %8 : vector<16x16x4xbf16> to vector<256x4xbf16>
    %10 = vector.extract_strided_slice %1 {offsets = [1, 1, 0], sizes = [16, 16, 4], strides = [1, 1, 1]} : vector<18x18x4xbf16> to vector<16x16x4xbf16>
    %11 = vector.shape_cast %10 : vector<16x16x4xbf16> to vector<256x4xbf16>
    %12 = vector.extract_strided_slice %1 {offsets = [1, 2, 0], sizes = [16, 16, 4], strides = [1, 1, 1]} : vector<18x18x4xbf16> to vector<16x16x4xbf16>
    %13 = vector.shape_cast %12 : vector<16x16x4xbf16> to vector<256x4xbf16>
    %14 = vector.extract_strided_slice %1 {offsets = [2, 0, 0], sizes = [16, 16, 4], strides = [1, 1, 1]} : vector<18x18x4xbf16> to vector<16x16x4xbf16>
    %15 = vector.shape_cast %14 : vector<16x16x4xbf16> to vector<256x4xbf16>
    %16 = vector.extract_strided_slice %1 {offsets = [2, 1, 0], sizes = [16, 16, 4], strides = [1, 1, 1]} : vector<18x18x4xbf16> to vector<16x16x4xbf16>
    %17 = vector.shape_cast %16 : vector<16x16x4xbf16> to vector<256x4xbf16>
    %18 = vector.extract_strided_slice %1 {offsets = [2, 2, 0], sizes = [16, 16, 4], strides = [1, 1, 1]} : vector<18x18x4xbf16> to vector<16x16x4xbf16>
    %19 = vector.shape_cast %18 : vector<16x16x4xbf16> to vector<256x4xbf16>
    %cst = arith.constant 0.000000e+00 : bf16
    %20 = vector.broadcast %cst : bf16 to vector<256x92xbf16>
    %21 = tpu.concatenate %3, %5, %7, %9, %11, %13, %15, %17, %19, %20 in 1 : vector<256x4xbf16>, vector<256x4xbf16>, vector<256x4xbf16>, vector<256x4xbf16>, vector<256x4xbf16>, vector<256x4xbf16>, vector<256x4xbf16>, vector<256x4xbf16>, vector<256x4xbf16>, vector<256x92xbf16> -> vector<256x128xbf16>
    %c0_3 = arith.constant 0 : index
    %c0_4 = arith.constant 0 : index
    %22 = vector.load %arg2[%c0_3, %c0_4] : memref<128x128xbf16, #tpu.memory_space<vmem>>, vector<128x128xbf16>
    %cst_5 = arith.constant dense<0.000000e+00> : vector<256x128xf32>
    %23 = tpu.matmul %21, %22, %cst_5 {dimension_numbers = #tpu.dot_dimension_numbers<[1], [0], [0], [1], [0, 0, 1, 1], [], []>} : vector<256x128xbf16>, vector<128x128xbf16>, vector<256x128xf32> -> vector<256x128xf32>
    %c0_6 = arith.constant 0 : index
    %c0_7 = arith.constant 0 : index
    %24 = vector.load %arg3[%c0_6, %c0_7] : memref<1x128xf32, #tpu.memory_space<vmem>>, vector<1x128xf32>
    %25 = vector.broadcast %24 : vector<1x128xf32> to vector<256x128xf32>
    %26 = arith.addf %23, %25 : vector<256x128xf32>
    %27 = arith.negf %26 : vector<256x128xf32>
    %28 = math.exp %27 : vector<256x128xf32>
    %cst_8 = arith.constant 1.000000e+00 : f32
    %29 = vector.broadcast %cst_8 : f32 to vector<256x128xf32>
    %30 = arith.addf %29, %28 : vector<256x128xf32>
    %31 = arith.divf %29, %30 : vector<256x128xf32>
    %32 = arith.mulf %26, %31 : vector<256x128xf32>
    %cst_9 = arith.constant dense<0.000000e+00> : vector<128xf32>
    %33 = vector.multi_reduction <add>, %32, %cst_9 [0] : vector<256x128xf32> to vector<128xf32>
    %34 = vector.shape_cast %33 : vector<128xf32> to vector<1x128xf32>
    %c0_10 = arith.constant 0 : index
    %c0_11 = arith.constant 0 : index
    %35 = vector.load %arg4[%c0_10, %c0_11] : memref<128x128xf32, #tpu.memory_space<vmem>>, vector<128x128xf32>
    %cst_12 = arith.constant dense<0.000000e+00> : vector<1x128xf32>
    %36 = tpu.matmul %34, %35, %cst_12 {dimension_numbers = #tpu.dot_dimension_numbers<[1], [0], [0], [1], [0, 0, 1, 1], [], []>} : vector<1x128xf32>, vector<128x128xf32>, vector<1x128xf32> -> vector<1x128xf32>
    %c0_13 = arith.constant 0 : index
    %c0_14 = arith.constant 0 : index
    %37 = vector.load %arg5[%c0_13, %c0_14] : memref<1x128xf32, #tpu.memory_space<vmem>>, vector<1x128xf32>
    %38 = arith.addf %36, %37 : vector<1x128xf32>
    %39 = vector.shape_cast %38 : vector<1x128xf32> to vector<1x128xf32>
    %40 = vector.broadcast %39 : vector<1x128xf32> to vector<8x128xf32>
    %c0_15 = arith.constant 0 : index
    %c0_16 = arith.constant 0 : index
    %c0_17 = arith.constant 0 : index
    %41 = vector.load %arg6[%c0_15, %c0_16, %c0_17] : memref<1x8x128xf32, #tpu.memory_space<vmem>>, vector<1x8x128xf32>
    %42 = vector.shape_cast %41 : vector<1x8x128xf32> to vector<8x128xf32>
    %43 = vector.shape_cast %40 : vector<8x128xf32> to vector<1x8x128xf32>
    tpu.vector_store %arg6[%c0_15, %c0_16, %c0_17], %43 {strides = array<i32>} : memref<1x8x128xf32, #tpu.memory_space<vmem>>, vector<1x8x128xf32>,
    return
  }
  func.func @transform_0(%arg0: i32) -> (i32, i32, i32, i32) {
    %c0_i32 = arith.constant 0 : i32
    %c0_i32_0 = arith.constant 0 : i32
    %c0_i32_1 = arith.constant 0 : i32
    %c0_i32_2 = arith.constant 0 : i32
    return %arg0, %c0_i32, %c0_i32_0, %c0_i32_1 : i32, i32, i32, i32
  }
  func.func @transform_1(%arg0: i32) -> (i32, i32) {
    %c0_i32 = arith.constant 0 : i32
    %c0_i32_0 = arith.constant 0 : i32
    %c0_i32_1 = arith.constant 0 : i32
    return %c0_i32, %c0_i32_0 : i32, i32
  }
  func.func @transform_2(%arg0: i32) -> (i32, i32) {
    %c0_i32 = arith.constant 0 : i32
    %c0_i32_0 = arith.constant 0 : i32
    %c0_i32_1 = arith.constant 0 : i32
    return %c0_i32, %c0_i32_0 : i32, i32
  }
  func.func @transform_3(%arg0: i32) -> (i32, i32) {
    %c0_i32 = arith.constant 0 : i32
    %c0_i32_0 = arith.constant 0 : i32
    %c0_i32_1 = arith.constant 0 : i32
    return %c0_i32, %c0_i32_0 : i32, i32
  }
  func.func @transform_4(%arg0: i32) -> (i32, i32) {
    %c0_i32 = arith.constant 0 : i32
    %c0_i32_0 = arith.constant 0 : i32
    %c0_i32_1 = arith.constant 0 : i32
    return %c0_i32, %c0_i32_0 : i32, i32
  }
  func.func @transform_5(%arg0: i32) -> (i32, i32, i32) {
    %c0_i32 = arith.constant 0 : i32
    %c0_i32_0 = arith.constant 0 : i32
    %c0_i32_1 = arith.constant 0 : i32
    return %arg0, %c0_i32, %c0_i32_0 : i32, i32, i32
  }
}

</mosaic_0001>

<bundles_post_ra>
// kernel: tpu_custom_call.1
= control target key start
LH: loop header
LB: loop body
LE: loop exit
PB: predicated region body
PF: predicated region fallthrough
CT: control target
= control target key end

     0   :  { %10 = vsyncpa [#allocation3], 0  ;;  %s5078_s0 = inlined_call_operand.vmem [shape: bf16[2,18,18,4], index: 0, kind: input, shape index: {}]   ;;  %s5079_s1 = inlined_call_operand.vmem [shape: bf16[128,128], index: 1, kind: input, shape index: {}]   ;;  %s5080_s2 = inlined_call_operand.vmem [shape: f32[1,128], index: 2, kind: input, shape index: {}]   ;;  %s5081_s3 = inlined_call_operand.vmem [shape: f32[128,128], index: 3, kind: input, shape index: {}]   ;;  %s5082_s4 = inlined_call_operand.vmem [shape: f32[1,128], index: 4, kind: input, shape index: {}]   ;;  %s5083_s5 = inlined_call_operand.hbm [shape: f32[2,8,128], index: 5, kind: output, shape index: {}]  }
   0x1   :  { %12 = vsyncpa [#allocation3 + $0x1], 0  ;;  %s3094_s18 = smov 0   ;;  %s3096_s19 = smov 0  }
   0x2   :  { %s3098_s20 = smov 0   ;;  %s3100_s21 = smov 0  }
   0x3 LB: > { %s3115_s22 = sadd.s32 4294967295, %s3054_s21   ;;  %s2576_s23 = sadd.s32 4294967294, %s3054_s21   ;;  %s3054_s21 = sphi %s3100_s21, %s5165_s21   ;;  %s3050_s20 = sphi %s3098_s20, %s5164_s20   ;;  %s3046_s19 = sphi %s3096_s19, %s5163_s19   ;;  %s3042_s18 = sphi %s3094_s18, %s5162_s18  }
   0x4   : > { %s3119_s24 = sadd.s32 1, %s3054_s21   ;;  %s135_s25 = sadd.s32 1, %s3050_s20 }
   0x5   : > { %s132_s26 = ssub.s32 %s3054_s21, %s3119_s24  ;;  %p145_p0 = scmp.ne.s32.totalorder %s3050_s20, %s3046_s19 }
   0x6   : > { %p133_p1 = scmp.eq.s32.totalorder %s132_s26, 0  ;;  %p146_p2 = scmp.eq.s32.totalorder %s3115_s22, 1 }
   0x7   : > { %p151_p3 = scmp.ne.s32.totalorder %s3046_s19, %s3042_s18  ;;  %p152_p4 = scmp.eq.s32.totalorder %s2576_s23, 1 }
   0x8   : > { %s3130_s27 = scalar_select %p133_p1, %s3050_s20, %s135_s25  }
   0x9   : > { %p3132_p5 = por %p146_p2, %p145_p0  ;;  %p3136_p6 = por %p152_p4, %p151_p3 }
   0xa   : > { %p2579_p7 = scmp.ge.s32.totalorder %s3054_s21, 1  ;;  %p190_p8 = scmp.lt.s32.totalorder %s3054_s21, 3 }
   0xc   : > { %p191_p9 = pnand %p2579_p7, %p190_p8 }
   0xd   : > { %p218_p10 = scmp.lt.s32.totalorder (!%p191_p9), %s3115_s22, 1  ;;  %s3056_s10 = smov (!%p191_p9), 12  }
   0xe   : > { %194 = sbr.rel (%p191_p9) target bundleno = 816 (0x330), region = 40  ;;  %s3057_s11 = smov (!%p191_p9), 24  }
   0xf   : > { %s3058_s12 = smov (!%p191_p9), 8   ;;  %s3059_s13 = smov (!%p191_p9), 20  }
  0x10   : > { %s3060_s14 = smov (!%p191_p9), 16   ;;  %s3061_s15 = smov (!%p191_p9), 4  }
  0x11   : > { %s3062_s16 = smov (!%p191_p9), 28   ;;  %s3063_s17 = smov (!%p191_p9), 32  }
  0x13   : > { %s219_s30 = scalar_select %p218_p10, %s3115_s22, 1  ;;  %vm713_vm0 = vcmask 1042432   ;;  %vm714_vm1 = vcmask 1046532   ;;  %vm278_vm2 = vsmask.f32 3328  ;;  %vm1314_vm6 = vcmask 31744  }
  0x14   : > { %vm279_vm3 = vsmask.f32 7440  ;;  %vm3156_vm4 = vmor %vm713_vm0, %vm714_vm1  ;;  %vm1363_vm7 = vcmask 64512   ;;  %vm1396_vm8 = vcmask 97280   ;;  %vm1429_vm9 = vcmask 130048  }
  0x15   : > { %s2806_s6 = smul.u32 216, %s219_s30  ;;  %vm3172_vm5 = vmor %vm278_vm2, %vm279_vm3  ;;  %vm1462_vm10 = vcmask 162816   ;;  %vm1495_vm11 = vcmask 195584   ;;  %vm1528_vm12 = vcmask 228352   ;;  %vm1561_vm13 = vcmask 261120  }
  0x16   : > { %vm1594_vm14 = vcmask 293888  }
  0x17   : > { %s3147_s9 = scalar_lea.vmem %s5078_s0, %s2806_s6 }
  0x18   : > { %v2757_v0 = vld [vmem:[%s3147_s9 + $0xc] sm:$0xff]  ;;  %v3151_v1 = vld [vmem:[%s3147_s9 + $0x18] sm:$0xff]  ;;  %v224_v2 = vld [vmem:[%s3147_s9] sm:$0xf] }
  0x19   : > { %v225_v3 = vld [vmem:[%s3147_s9 + $0x4] sm:$0xf]  ;;  %v226_v4 = vld [vmem:[%s3147_s9 + $0x8] sm:$0x1]  ;;  %v2582_v6 = vrot.slane %v224_v2, 9  ;;  %v282_v7 = vshrl.u32 %v224_v2, 16  ;;  %1107 = vrot.lane.b32.xlu1 %v2757_v0, %s3056_s10  ;;  %1212 = vrot.lane.b32.xlu2 %v3151_v1, %s3057_s11 }
  0x1a   : > { %v295_v8 = vshrl.u32 %v225_v3, 16  ;;  %v301_v9 = vshll.u32 %v226_v4, 16  ;;  %v718_v10 = vrot.slane %v225_v3, 5  ;;  %v721_v11 = vrot.slane %v226_v4, 5  ;;  %v227_v12 = vld [vmem:[%s3147_s9 + $0xc] sm:$0xf] }
  0x1b   : > { %v285_v13 = vshll.u32 %v224_v2, 16  ;;  %v228_v14 = vld [vmem:[%s3147_s9 + $0x10] sm:$0xf]  ;;  %v229_v15 = vld [vmem:[%s3147_s9 + $0x14] sm:$0x1]  ;;  %v306_v16 = vshrl.u32 %v227_v12, 16 }
  0x1c   : > { %v719_v17 = vsel %vm3156_vm4, %v2582_v6, %v718_v10  ;;  %v720_v18 = vrot.slane %v718_v10, 4  ;;  %v309_v19 = vshll.u32 %v227_v12, 16  ;;  %v315_v20 = vshll.u32 %v228_v14, 16  ;;  %v3179_v46 = vld [vmem:[%s3147_s9 + $0x18] sm:$0xf] }
  0x1d   : > { %v1024_v21 = vunpack.c.l.b16 %v719_v17  ;;  %v308_v22 = vrot.slane %v306_v16, 4  ;;  %v319_v23 = vshrl.u32 %v228_v14, 16  ;;  %v325_v24 = vshll.u32 %v229_v15, 16  ;;  %v3187_v55 = vld [vmem:[%s3147_s9 + $0x1c] sm:$0xf] }
  0x1e   : > { %v722_v25 = vsel %vm3156_vm4, %v720_v18, %v721_v11  ;;  %v311_v26 = vrot.slane %v309_v19, 5  ;;  %v317_v27 = vrot.slane %v315_v20, 5  ;;  %v2583_v28 = vrot.slane %v227_v12, 9  ;;  %v3192_v58 = vld [vmem:[%s3147_s9 + $0x20] sm:$0x1] }
  0x1f   : > { %v1025_v29 = vunpack.c.l.b16 %v722_v25  ;;  %v321_v30 = vrot.slane %v319_v23, 4  ;;  %v327_v31 = vrot.slane %v325_v24, 5  ;;  %v725_v32 = vrot.slane %v228_v14, 5  ;;  %v243_v2 = vld [vmem:[%s3147_s9 + $0x4c] sm:$0xf] }
  0x20   : > { %v312_v33 = vor.u32 %v311_v26, %v308_v22  ;;  %v728_v34 = vrot.slane %v229_v15, 5  ;;  %v284_v35 = vrot.slane %v282_v7, 4  ;;  %v287_v36 = vrot.slane %v285_v13, 5  ;;  %v242_v13 = vld [vmem:[%s3147_s9 + $0x48] sm:$0xf] }
  0x21   : > { %v1056_v37 = vpack.c.b16 %v1025_v29, %v1024_v21  ;;  %v322_v39 = vor.u32 %v321_v30, %v317_v27  ;;  %v726_v40 = vsel %vm3156_vm4, %v2583_v28, %v725_v32  ;;  %v727_v41 = vrot.slane %v725_v32, 4 }
  0x22   : > { %v313_v42 = vrot.slane %v312_v33, 4  ;;  %v1026_v43 = vunpack.c.l.b16 %v726_v40  ;;  %v288_v44 = vor.u32 %v287_v36, %v284_v35  ;;  %v291_v45 = vshll.u32 %v225_v3, 16 }
  0x23   : > { %1072 = vrot.lane.b32.xlu0 %v1056_v37, %s3058_s12  ;;  %v323_v47 = vrot.slane %v322_v39, 4  ;;  %v729_v48 = vsel %vm3156_vm4, %v727_v41, %v728_v34  ;;  %v297_v49 = vrot.slane %v295_v8, 4  ;;  %v303_v50 = vrot.slane %v301_v9, 5  ;;  %v244_v8 = vld [vmem:[%s3147_s9 + $0x50] sm:$0x1] }
  0x24   : > { %v318_v51 = vsel %vm3172_vm5, %v313_v42, %v317_v27  ;;  %v1027_v52 = vunpack.c.l.b16 %v729_v48  ;;  %v289_v53 = vrot.slane %v288_v44, 4  ;;  %v293_v54 = vrot.slane %v291_v45, 5  ;;  %v3221_v34 = vld [vmem:[%s3147_s9 + $0x54] sm:$0xf]  ;;  %v3225_v44 = vld [vmem:[%s3147_s9 + $0x58] sm:$0xf] }
  0x25   : > { %v328_v56 = vsel %vm3172_vm5, %v323_v47, %v327_v31  ;;  %v946_v57 = vunpack.c.l.b16 %v318_v51  ;;  %v330_v59 = vshrl.u32 %v3179_v46, 16  ;;  %v333_v60 = vshll.u32 %v3179_v46, 16  ;;  %v3232_v48 = vld [vmem:[%s3147_s9 + $0x5c] sm:$0x1] }
  0x26   : > { %v947_v61 = vunpack.c.l.b16 %v328_v56  ;;  %v3196_v62 = vpack.c.b16 %v1027_v52, %v1026_v43  ;;  %v294_v63 = vsel %vm3172_vm5, %v289_v53, %v293_v54  ;;  %v298_v0 = vor.u32 %v297_v49, %v293_v54 }
  0x27   : > { %v944_v3 = vunpack.c.l.b16 %v294_v63  ;;  %v332_v4 = vrot.slane %v330_v59, 4  ;;  %v335_v6 = vrot.slane %v333_v60, 5  ;;  %v339_v7 = vshll.u32 %v3187_v55, 16 }
  0x28   : > { %v3203_v9 = vpack.c.b16 %v947_v61, %v946_v57  ;;  %1177 = vrot.lane.b32.xlu2 %v3196_v62, %s3059_s13  ;;  %v299_v10 = vrot.slane %v298_v0, 4  ;;  %v343_v11 = vshrl.u32 %v3187_v55, 16  ;;  %v349_v12 = vshll.u32 %v3192_v58, 16 }
  0x29   : > { %v336_v14 = vor.u32 %v335_v6, %v332_v4  ;;  %v341_v15 = vrot.slane %v339_v7, 5  ;;  %v2588_v16 = vrot.slane %v242_v13, 9  ;;  %v760_v17 = vrot.slane %v243_v2, 5 }
  0x2a   : > { %1142 = vrot.lane.b32.xlu1 %v3203_v9, %s3060_s14  ;;  %v304_v18 = vsel %vm3172_vm5, %v299_v10, %v303_v50  ;;  %v345_v19 = vrot.slane %v343_v11, 4  ;;  %v351_v20 = vrot.slane %v349_v12, 5  ;;  %v763_v21 = vrot.slane %v244_v8, 5 }
  0x2b   : > { %v945_v22 = vunpack.c.l.b16 %v304_v18  ;;  %v337_v23 = vrot.slane %v336_v14, 4  ;;  %v761_v24 = vsel %vm3156_vm4, %v2588_v16, %v760_v17  ;;  %v762_v25 = vrot.slane %v760_v17, 4 }
  0x2c   : > { %v346_v26 = vor.u32 %v345_v19, %v341_v15  ;;  %v1036_v27 = vunpack.c.l.b16 %v761_v24  ;;  %v426_v28 = vshrl.u32 %v242_v13, 16  ;;  %v429_v29 = vshll.u32 %v242_v13, 16  ;;  %v250_v24 = vld [vmem:[%s3147_s9 + $0x68] sm:$0x1] }
  0x2d   : > { %v976_v30 = vpack.c.b16 %v945_v22, %v944_v3  ;;  %v342_v31 = vsel %vm3172_vm5, %v337_v23, %v341_v15  ;;  %v764_v32 = vsel %vm3156_vm4, %v762_v25, %v763_v21  ;;  %v435_v33 = vshll.u32 %v243_v2, 16  ;;  %v2763_v25 = vld [vmem:[%s3147_s9 + $0x54] sm:$0xff] }
  0x2e   : > { %v347_v35 = vrot.slane %v346_v26, 4  ;;  %v948_v36 = vunpack.c.l.b16 %v342_v31  ;;  %v1037_v37 = vunpack.c.l.b16 %v764_v32  ;;  %v428_v39 = vrot.slane %v426_v28, 4 }
  0x2f   : > { %992 = vrot.lane.b32.xlu0 %v976_v30, %s3061_s15  ;;  %v431_v40 = vrot.slane %v429_v29, 5  ;;  %v437_v41 = vrot.slane %v435_v33, 5  ;;  %v439_v42 = vshrl.u32 %v243_v2, 16  ;;  %v445_v43 = vshll.u32 %v244_v8, 16  ;;  %v3245_v8 = vld [vmem:[%s3147_s9 + $0x60] sm:$0xf] }
  0x30   : > { %v352_v45 = vsel %vm3172_vm5, %v347_v35, %v351_v20  ;;  %v3229_v47 = vpack.c.b16 %v1037_v37, %v1036_v27  ;;  %v450_v49 = vshrl.u32 %v3221_v34, 16  ;;  %v453_v50 = vshll.u32 %v3221_v34, 16  ;;  %v3258_v20 = vld [vmem:[%s3147_s9 + $0x64] sm:$0xf] }
  0x31   : > { %v949_v51 = vunpack.c.l.b16 %v352_v45  ;;  %v432_v52 = vor.u32 %v431_v40, %v428_v39  ;;  %v441_v53 = vrot.slane %v439_v42, 4  ;;  %v447_v54 = vrot.slane %v445_v43, 5 }
  0x32   : > { %1084 = vrot.lane.b32.xlu2 %v3229_v47, %s3058_s12  ;;  %v452_v56 = vrot.slane %v450_v49, 4  ;;  %v455_v57 = vrot.slane %v453_v50, 5  ;;  %v459_v59 = vshll.u32 %v3225_v44, 16  ;;  %v463_v60 = vshrl.u32 %v3225_v44, 16 }
  0x33   : > { %v3240_v61 = vpack.c.b16 %v949_v51, %v948_v36  ;;  %v433_v63 = vrot.slane %v432_v52, 4  ;;  %v442_v0 = vor.u32 %v441_v53, %v437_v41  ;;  %v469_v2 = vshll.u32 %v3232_v48, 16 }
  0x34   : > { %v456_v3 = vor.u32 %v455_v57, %v452_v56  ;;  %v461_v4 = vrot.slane %v459_v59, 5  ;;  %v465_v6 = vrot.slane %v463_v60, 4  ;;  %v2584_v7 = vrot.slane %v3179_v46, 9  ;;  %v3289_v56 = vld [vmem:[%s3147_s9 + $0x60] sm:$0xff] }
  0x35   : > { %1247 = vrot.lane.b32.xlu1 %v3240_v61, %s3062_s16  ;;  %v438_v10 = vsel %vm3172_vm5, %v433_v63, %v437_v41  ;;  %v443_v11 = vrot.slane %v442_v0, 4  ;;  %v471_v12 = vrot.slane %v469_v2, 5  ;;  %v732_v13 = vrot.slane %v3187_v55, 5  ;;  %v3297_v63 = vld [vmem:[%s3147_s9 + $0x24] sm:$0xf] }
  0x36   : > { %v956_v14 = vunpack.c.l.b16 %v438_v10  ;;  %v457_v15 = vrot.slane %v456_v3, 4  ;;  %v466_v16 = vor.u32 %v465_v6, %v461_v4  ;;  %v735_v46 = vrot.slane %v3192_v58, 5  ;;  %v234_v2 = vld [vmem:[%s3147_s9 + $0x28] sm:$0xf] }
  0x37   : > { %v448_v17 = vsel %vm3172_vm5, %v443_v11, %v447_v54  ;;  %v733_v18 = vsel %vm3156_vm4, %v2584_v7, %v732_v13  ;;  %v734_v19 = vrot.slane %v732_v13, 4  ;;  %v474_v21 = vshrl.u32 %v3245_v8, 16 }
  0x38   : > { %v957_v22 = vunpack.c.l.b16 %v448_v17  ;;  %v462_v55 = vsel %vm3172_vm5, %v457_v15, %v461_v4  ;;  %v467_v23 = vrot.slane %v466_v16, 4  ;;  %v477_v28 = vshll.u32 %v3245_v8, 16 }
  0x39   : > { %v958_v26 = vunpack.c.l.b16 %v462_v55  ;;  %v736_v58 = vsel %vm3156_vm4, %v734_v19, %v735_v46  ;;  %v476_v27 = vrot.slane %v474_v21, 4  ;;  %v1028_v31 = vunpack.c.l.b16 %v733_v18  ;;  %v235_v21 = vld [vmem:[%s3147_s9 + $0x2c] sm:$0x1] }
  0x3a   : > { %v3268_v29 = vpack.c.b16 %v957_v22, %v956_v14  ;;  %v472_v30 = vsel %vm3172_vm5, %v467_v23, %v471_v12  ;;  %v483_v32 = vshll.u32 %v3258_v20, 16  ;;  %v479_v35 = vrot.slane %v477_v28, 5  ;;  %v3328_v28 = vld [vmem:[%s3147_s9 + $0x88] sm:$0xf] }
  0x3b   : > { %v959_v33 = vunpack.c.l.b16 %v472_v30  ;;  %v487_v36 = vshrl.u32 %v3258_v20, 16  ;;  %v493_v37 = vshll.u32 %v250_v24, 16  ;;  %v1029_v39 = vunpack.c.l.b16 %v736_v58 }
  0x3c   : > { %1004 = vrot.lane.b32.xlu0 %v3268_v29, %s3061_s15  ;;  %v485_v40 = vrot.slane %v483_v32, 5  ;;  %v2589_v41 = vrot.slane %v3221_v34, 9  ;;  %v767_v42 = vrot.slane %v3225_v44, 5  ;;  %v480_v45 = vor.u32 %v479_v35, %v476_v27  ;;  %v3325_v27 = vld [vmem:[%s3147_s9 + $0x84] sm:$0xf] }
  0x3d   : > { %1119 = vrot.lane.b32.xlu1 %v2763_v25, %s3056_s10  ;;  %v3279_v43 = vpack.c.b16 %v959_v33, %v958_v26  ;;  %v489_v49 = vrot.slane %v487_v36, 4  ;;  %v770_v51 = vrot.slane %v3232_v48, 5  ;;  %v495_v54 = vrot.slane %v493_v37, 5 }
  0x3e   : > { %v769_v50 = vrot.slane %v767_v42, 4  ;;  %v481_v52 = vrot.slane %v480_v45, 4  ;;  %v3284_v34 = vpack.c.b16 %v1029_v39, %v1028_v31  ;;  %v768_v44 = vsel %vm3156_vm4, %v2589_v41, %v767_v42 }
  0x3f   : > { %1154 = vrot.lane.b32.xlu2 %v3279_v43, %s3060_s14  ;;  %v490_v53 = vor.u32 %v489_v49, %v485_v40  ;;  %v774_v60 = vrot.slane %v3258_v20, 5  ;;  %v1038_v4 = vunpack.c.l.b16 %v768_v44  ;;  %v2590_v6 = vrot.slane %v3245_v8, 9 }
  0x40   : > { %v486_v57 = vsel %vm3172_vm5, %v481_v52, %v485_v40  ;;  %v771_v48 = vsel %vm3156_vm4, %v769_v50, %v770_v51  ;;  %v354_v11 = vshrl.u32 %v3297_v63, 16  ;;  %v357_v12 = vshll.u32 %v3297_v63, 16 }
  0x41   : > { %v491_v59 = vrot.slane %v490_v53, 4  ;;  %v960_v0 = vunpack.c.l.b16 %v486_v57  ;;  %v1039_v10 = vunpack.c.l.b16 %v771_v48  ;;  %v776_v13 = vrot.slane %v774_v60, 4  ;;  %v3348_v53 = vld [vmem:[%s3147_s9 + $0x8c] sm:$0x1] }
  0x42   : > { %v777_v14 = vrot.slane %v250_v24, 5  ;;  %v363_v15 = vshll.u32 %v234_v2, 16  ;;  %v367_v16 = vshrl.u32 %v234_v2, 16  ;;  %v356_v17 = vrot.slane %v354_v11, 4  ;;  %v3367_v11 = vld [vmem:[%s3147_s9 + $0x94] sm:$0xf] }
  0x43   : > { %v496_v3 = vsel %vm3172_vm5, %v491_v59, %v495_v54  ;;  %v3313_v8 = vpack.c.b16 %v1039_v10, %v1038_v4  ;;  %v359_v18 = vrot.slane %v357_v12, 5  ;;  %v775_v19 = vsel %vm3156_vm4, %v2590_v6, %v774_v60  ;;  %v3364_v10 = vld [vmem:[%s3147_s9 + $0x90] sm:$0xf] }
  0x44   : > { %1282 = vrot.lane.b32.xlu0 %v3284_v34, %s3063_s17  ;;  %v961_v7 = vunpack.c.l.b16 %v496_v3  ;;  %v778_v20 = vsel %vm3156_vm4, %v776_v13, %v777_v14  ;;  %v365_v22 = vrot.slane %v363_v15, 5  ;;  %v369_v55 = vrot.slane %v367_v16, 4 }
  0x45   : > { %1224 = vrot.lane.b32.xlu1 %v3289_v56, %s3057_s11  ;;  %v1040_v23 = vunpack.c.l.b16 %v775_v19  ;;  %v1041_v24 = vunpack.c.l.b16 %v778_v20  ;;  %v360_v25 = vor.u32 %v359_v18, %v356_v17  ;;  %v373_v26 = vshll.u32 %v235_v21, 16  ;;  %v251_v19 = vld [vmem:[%s3147_s9 + $0x6c] sm:$0xf]  ;;  %v252_v20 = vld [vmem:[%s3147_s9 + $0x70] sm:$0xf] }
  0x46   : > { %v3309_v46 = vpack.c.b16 %v961_v7, %v960_v0  ;;  %v370_v58 = vor.u32 %v369_v55, %v365_v22  ;;  %v546_v33 = vshrl.u32 %v3325_v27, 16  ;;  %v549_v36 = vshll.u32 %v3325_v27, 16 }
  0x47   : > { %v3332_v30 = vpack.c.b16 %v1041_v24, %v1040_v23  ;;  %v361_v31 = vrot.slane %v360_v25, 4  ;;  %v375_v32 = vrot.slane %v373_v26, 5  ;;  %v559_v37 = vshrl.u32 %v3328_v28, 16  ;;  %v3392_v23 = vld [vmem:[%s3147_s9 + $0x98] sm:$0x1] }
  0x48   : > { %1259 = vrot.lane.b32.xlu2 %v3309_v46, %s3062_s16  ;;  %v371_v35 = vrot.slane %v370_v58, 4  ;;  %v739_v39 = vrot.slane %v234_v2, 5  ;;  %v2585_v40 = vrot.slane %v3297_v63, 9  ;;  %v548_v41 = vrot.slane %v546_v33, 4 }
  0x49   : > { %v551_v45 = vrot.slane %v549_v36, 5  ;;  %v561_v50 = vrot.slane %v559_v37, 4  ;;  %v742_v52 = vrot.slane %v235_v21, 5  ;;  %v565_v60 = vshll.u32 %v3348_v53, 16 }
  0x4a   : > { %v376_v42 = vsel %vm3172_vm5, %v371_v35, %v375_v32  ;;  %v741_v51 = vrot.slane %v739_v39, 4  ;;  %v740_v57 = vsel %vm3156_vm4, %v2585_v40, %v739_v39  ;;  %v570_v15 = vshrl.u32 %v3364_v10, 16 }
  0x4b   : > { %v951_v44 = vunpack.c.l.b16 %v376_v42  ;;  %v552_v59 = vor.u32 %v551_v45, %v548_v41  ;;  %v1030_v2 = vunpack.c.l.b16 %v740_v57  ;;  %v567_v7 = vrot.slane %v565_v60, 5 }
  0x4c   : > { %1189 = vrot.lane.b32.xlu0 %v3313_v8, %s3059_s13  ;;  %v743_v63 = vsel %vm3156_vm4, %v741_v51, %v742_v52  ;;  %v573_v16 = vshll.u32 %v3364_v10, 16  ;;  %v579_v17 = vshll.u32 %v3367_v11, 16  ;;  %v583_v18 = vshrl.u32 %v3367_v11, 16 }
  0x4d   : > { %994 = vrot.lane.b32.xlu1 %v3203_v9, %s3061_s15  ;;  %v555_v9 = vshll.u32 %v3328_v28, 16  ;;  %v1031_v3 = vunpack.c.l.b16 %v743_v63  ;;  %v553_v4 = vrot.slane %v552_v59, 4  ;;  %v795_v55 = vrot.slane %v3328_v28, 5 }
  0x4e   : > { %v572_v24 = vrot.slane %v570_v15, 4  ;;  %v575_v25 = vrot.slane %v573_v16, 5  ;;  %v581_v26 = vrot.slane %v579_v17, 5  ;;  %v585_v58 = vrot.slane %v583_v18, 4  ;;  %v3426_v18 = vld [vmem:[%s3147_s9 + $0x90] sm:$0xff] }
  0x4f   : > { %v557_v49 = vrot.slane %v555_v9, 5  ;;  %v3374_v12 = vpack.c.b16 %v1031_v3, %v1030_v2  ;;  %v501_v32 = vshll.u32 %v251_v19, 16  ;;  %v507_v33 = vshll.u32 %v252_v20, 16  ;;  %v3413_v2 = vld [vmem:[%s3147_s9 + $0x6c] sm:$0xff] }
  0x50   : > { %1074 = vrot.lane.b32.xlu2 %v3196_v62, %s3058_s12  ;;  %v366_v62 = vsel %vm3172_vm5, %v361_v31, %v365_v22  ;;  %v498_v31 = vshrl.u32 %v251_v19, 16  ;;  %v511_v35 = vshrl.u32 %v252_v20, 16  ;;  %v2593_v36 = vrot.slane %v3325_v27, 9 }
  0x51   : > { %v950_v54 = vunpack.c.l.b16 %v366_v62  ;;  %v562_v48 = vor.u32 %v561_v50, %v557_v49  ;;  %v558_v13 = vsel %vm3172_vm5, %v553_v4, %v557_v49  ;;  %v797_v37 = vrot.slane %v795_v55, 4 }
  0x52   : > { %v966_v21 = vunpack.c.l.b16 %v558_v13  ;;  %v798_v28 = vrot.slane %v3348_v53, 5  ;;  %v589_v39 = vshll.u32 %v3392_v23, 16  ;;  %v576_v62 = vor.u32 %v575_v25, %v572_v24 }
  0x53   : > { %v3359_v0 = vpack.c.b16 %v951_v44, %v950_v54  ;;  %v563_v6 = vrot.slane %v562_v48, 4  ;;  %v586_v40 = vor.u32 %v585_v58, %v581_v26  ;;  %v781_v41 = vrot.slane %v252_v20, 5 }
  0x54   : > { %1294 = vrot.lane.b32.xlu0 %v3332_v30, %s3063_s17  ;;  %v500_v42 = vrot.slane %v498_v31, 4  ;;  %v503_v45 = vrot.slane %v501_v32, 5  ;;  %v509_v49 = vrot.slane %v507_v33, 5  ;;  %v513_v50 = vrot.slane %v511_v35, 4 }
  0x55   : > { %1144 = vrot.lane.b32.xlu1 %v3240_v61, %s3060_s14  ;;  %v568_v14 = vsel %vm3172_vm5, %v563_v6, %v567_v7  ;;  %v796_v27 = vsel %vm3156_vm4, %v2593_v36, %v795_v55  ;;  %v799_v51 = vsel %vm3156_vm4, %v797_v37, %v798_v28  ;;  %v591_v52 = vrot.slane %v589_v39, 5  ;;  %v2781_v55 = vld [vmem:[%s5079_s1 + $0x38] sm:$0xff] }
  0x56   : > { %v967_v22 = vunpack.c.l.b16 %v568_v14  ;;  %v577_v53 = vrot.slane %v576_v62, 4  ;;  %v587_v54 = vrot.slane %v586_v40, 4  ;;  %v2591_v44 = vrot.slane %v251_v19, 9  ;;  %1696 = vmatpush.bf16.msra.mxu0 %v2781_v55  ;;  %2783 = vmatpush.bf16.msra.mxu2 %v2781_v55 }
  0x57   : > { %v783_v57 = vrot.slane %v781_v41, 4  ;;  %v504_v48 = vor.u32 %v503_v45, %v500_v42  ;;  %v514_v60 = vor.u32 %v513_v50, %v509_v49  ;;  %v1046_v3 = vunpack.c.l.b16 %v796_v27  ;;  %2784 = vmatpush.bf16.msra.mxu3 %v2781_v55  ;;  %2782 = vmatpush.bf16.msra.mxu1 %v2781_v55  ;;  %v2780_v50 = vld [vmem:[%s5079_s1 + $0x30] sm:$0xff] }
  0x58   : > { %1179 = vrot.lane.b32.xlu2 %v3284_v34, %s3059_s13  ;;  %v3397_v9 = vpack.c.b16 %v967_v22, %v966_v21  ;;  %v1047_v4 = vunpack.c.l.b16 %v799_v51  ;;  %v582_v6 = vsel %vm3172_vm5, %v577_v53, %v581_v26  ;;  %v592_v7 = vsel %vm3172_vm5, %v587_v54, %v591_v52  ;;  %v263_v21 = vld [vmem:[%s3147_s9 + $0x9c] sm:$0xf]  ;;  %v264_v22 = vld [vmem:[%s3147_s9 + $0xa0] sm:$0xf] }
  0x59   : > { %v782_v13 = vsel %vm3156_vm4, %v2591_v44, %v781_v41  ;;  %v505_v15 = vrot.slane %v504_v48, 4  ;;  %v515_v16 = vrot.slane %v514_v60, 4  ;;  %v968_v19 = vunpack.c.l.b16 %v582_v6  ;;  %v3478_v6 = vld [vmem:[%s3147_s9 + $0x30] sm:$0xf] }
  0x5a   : > { %v969_v20 = vunpack.c.l.b16 %v592_v7  ;;  %v1042_v24 = vunpack.c.l.b16 %v782_v13  ;;  %v3435_v26 = vpack.c.b16 %v1047_v4, %v1046_v3  ;;  %v802_v32 = vrot.slane %v3367_v11, 5  ;;  %1697 = vmatpush.bf16.msra.mxu0 %v2780_v50  ;;  %2786 = vmatpush.bf16.msra.mxu2 %v2780_v50  ;;  %v3475_v4 = vld [vmem:[%s3147_s9 + $0x9c] sm:$0xff]  ;;  %v3481_v7 = vld [vmem:[%s3147_s9 + $0x34] sm:$0xf] }
  0x5b   : > { %v510_v58 = vsel %vm3172_vm5, %v505_v15, %v509_v49  ;;  %v594_v33 = vshrl.u32 %v263_v21, 16  ;;  %v597_v35 = vshll.u32 %v263_v21, 16  ;;  %v603_v36 = vshll.u32 %v264_v22, 16  ;;  %2787 = vmatpush.bf16.msra.mxu3 %v2780_v50  ;;  %2785 = vmatpush.bf16.msra.mxu1 %v2780_v50 }
  0x5c   : > { %1109 = vrot.lane.b32.xlu0 %v3151_v1, %s3056_s10  ;;  %v3372_v1 = vld [vmem:[%s3147_s9 + $0x24] sm:$0xff]  ;;  %v607_v37 = vshrl.u32 %v264_v22, 16  ;;  %v3444_v28 = vpack.c.b16 %v969_v20, %v968_v19  ;;  %v962_v62 = vunpack.c.l.b16 %v510_v58  ;;  %v2594_v40 = vrot.slane %v3364_v10, 9 }
  0x5d   : > { %1006 = vrot.lane.b32.xlu1 %v3279_v43, %s3061_s15  ;;  %v804_v42 = vrot.slane %v802_v32, 4  ;;  %v805_v45 = vrot.slane %v3392_v23, 5  ;;  %v809_v49 = vrot.slane %v264_v22, 5  ;;  %v599_v27 = vrot.slane %v597_v35, 5  ;;  %v265_v10 = vld [vmem:[%s3147_s9 + $0xa4] sm:$0x1] }
  0x5e   : > { %v3457_v51 = vrot.slane %v603_v36, 5  ;;  %v609_v52 = vrot.slane %v607_v37, 4  ;;  %v2779_v23 = vld [vmem:[%s5079_s1 + $0x28] sm:$0xff]  ;;  %v803_v53 = vsel %vm3156_vm4, %v2594_v40, %v802_v32  ;;  %v812_v48 = vrot.slane %v265_v10, 5 }
  0x5f   : > { %v806_v44 = vsel %vm3156_vm4, %v804_v42, %v805_v45  ;;  %v613_v3 = vshll.u32 %v265_v10, 16  ;;  %1698 = vmatpush.bf16.msra.mxu0 %v2779_v23  ;;  %2789 = vmatpush.bf16.msra.mxu2 %v2779_v23  ;;  %v1048_v13 = vunpack.c.l.b16 %v803_v53  ;;  %v378_v55 = vshrl.u32 %v3478_v6, 16  ;;  %v238_v45 = vld [vmem:[%s3147_s9 + $0x38] sm:$0x1] }
  0x60   : > { %1249 = vrot.lane.b32.xlu2 %v3359_v0, %s3062_s16  ;;  %2790 = vmatpush.bf16.msra.mxu3 %v2779_v23  ;;  %v391_v58 = vshrl.u32 %v3481_v7, 16 }
  0x61   : > { %2788 = vmatpush.bf16.msra.mxu1 %v2779_v23  ;;  %v2775_v23 = vld [vmem:[%s5079_s1 + $0x8] sm:$0xff] }
  0x62   : > { %v393_v42 = vrot.slane %v391_v58, 4  ;;  %v3559_v58 = vld [vmem:[%s3147_s9 + $0x3c] sm:$0xf] }
  0x64   : > { %1214 = vrot.lane.b32.xlu0 %v3372_v1, %s3057_s11 }
  0x65   : > { %1284 = vrot.lane.b32.xlu1 %v3374_v12, %s3063_s17 }
  0x68   : > { %1121 = vrot.lane.b32.xlu2 %v3289_v56, %s3056_s10  ;;  %v253_v56 = vld [vmem:[%s3147_s9 + $0x74] sm:$0x1] }
  0x69   : > { %v784_v59 = vrot.slane %v253_v56, 5  ;;  %v517_v63 = vshll.u32 %v253_v56, 16  ;;  %v596_v56 = vrot.slane %v594_v33, 4 }
  0x6b   : > { %v785_v14 = vsel %vm3156_vm4, %v783_v57, %v784_v59  ;;  %v519_v17 = vrot.slane %v517_v63, 5  ;;  %v2595_v57 = vrot.slane %v263_v21, 9  ;;  %v811_v59 = vrot.slane %v809_v49, 4 }
  0x6c   : > { %1086 = vrot.lane.b32.xlu0 %v3313_v8, %s3058_s12  ;;  %v1043_v25 = vunpack.c.l.b16 %v785_v14  ;;  %v600_v60 = vor.u32 %v599_v27, %v596_v56  ;;  %v610_v63 = vor.u32 %v609_v52, %v3457_v51  ;;  %v1049_v14 = vunpack.c.l.b16 %v806_v44 }
  0x6d   : > { %1014 = vrot.lane.b32.xlu1 %v3397_v9, %s3061_s15  ;;  %v520_v31 = vsel %vm3172_vm5, %v515_v16, %v519_v17  ;;  %v810_v15 = vsel %vm3156_vm4, %v2595_v57, %v809_v49  ;;  %v2778_v16 = vld [vmem:[%s5079_s1 + $0x20] sm:$0xff]  ;;  %v813_v17 = vsel %vm3156_vm4, %v811_v59, %v812_v48  ;;  %v615_v21 = vrot.slane %v613_v3, 5 }
  0x6e   : > { %v3446_v39 = vpack.c.b16 %v1043_v25, %v1042_v24  ;;  %v963_v41 = vunpack.c.l.b16 %v520_v31  ;;  %v601_v19 = vrot.slane %v600_v60, 4  ;;  %v611_v20 = vrot.slane %v610_v63, 4  ;;  %1699 = vmatpush.bf16.msra.mxu0 %v2778_v16  ;;  %v2777_v31 = vld [vmem:[%s5079_s1 + $0x18] sm:$0xff]  ;;  %2792 = vmatpush.bf16.msra.mxu2 %v2778_v16  ;;  %v2774_v60 = vld [vmem:[%s5079_s1] sm:$0xff] }
  0x6f   : > { %v381_v24 = vshll.u32 %v3478_v6, 16  ;;  %v387_v25 = vshll.u32 %v3481_v7, 16  ;;  %2793 = vmatpush.bf16.msra.mxu3 %v2778_v16  ;;  %v3503_v32 = vpack.c.b16 %v1049_v14, %v1048_v13  ;;  %2791 = vmatpush.bf16.msra.mxu1 %v2778_v16  ;;  %v1050_v33 = vunpack.c.l.b16 %v810_v15 }
  0x70   : > { %1191 = vrot.lane.b32.xlu2 %v3332_v30, %s3059_s13  ;;  %v3467_v54 = vpack.c.b16 %v963_v41, %v962_v62  ;;  %v1051_v35 = vunpack.c.l.b16 %v813_v17  ;;  %v606_v36 = vsel %vm3172_vm5, %v601_v19, %v3457_v51  ;;  %v616_v37 = vsel %vm3172_vm5, %v611_v20, %v615_v21 }
  0x71   : > { %v380_v62 = vrot.slane %v378_v55, 4  ;;  %v383_v40 = vrot.slane %v381_v24, 5  ;;  %v389_v41 = vrot.slane %v387_v25, 5  ;;  %v970_v50 = vunpack.c.l.b16 %v606_v36 }
  0x72   : > { %1700 = vmatpush.bf16.msra.mxu0 %v2777_v31  ;;  %2795 = vmatpush.bf16.msra.mxu2 %v2777_v31  ;;  %v3518_v49 = vpack.c.b16 %v1051_v35, %v1050_v33  ;;  %v971_v56 = vunpack.c.l.b16 %v616_v37  ;;  %v397_v52 = vshll.u32 %v238_v45, 16  ;;  %v746_v59 = vrot.slane %v3481_v7, 5  ;;  %v3567_v33 = vld [vmem:[%s3147_s9 + $0x30] sm:$0xff]  ;;  %v2756_v35 = vld [vmem:[%s3147_s9] sm:$0xff] }
  0x73   : > { %v3449_v11 = vpop.permute.xlu2 %1212  ;;  %2796 = vmatpush.bf16.msra.mxu3 %v2777_v31  ;;  %2794 = vmatpush.bf16.msra.mxu1 %v2777_v31  ;;  %v384_v27 = vor.u32 %v383_v40, %v380_v62  ;;  %v394_v51 = vor.u32 %v393_v42, %v389_v41  ;;  %v2586_v7 = vrot.slane %v3478_v6, 9  ;;  %v749_v14 = vrot.slane %v238_v45, 5  ;;  %v3562_v31 = vld [vmem:[%s3147_s9 + $0x40] sm:$0xf] }
  0x74   : > { %1156 = vrot.lane.b32.xlu0 %v3309_v46, %s3060_s14  ;;  %v3529_v53 = vpack.c.b16 %v971_v56, %v970_v50  ;;  %v399_v57 = vrot.slane %v397_v52, 5  ;;  %v748_v13 = vrot.slane %v746_v59, 4  ;;  %v405_v62 = vshll.u32 %v3559_v58, 16  ;;  %v3585_v52 = vld [vmem:[%s3147_s9 + $0x44] sm:$0x1] }
  0x75   : > { %1226 = vrot.lane.b32.xlu1 %v3413_v2, %s3057_s11  ;;  %v385_v44 = vrot.slane %v384_v27, 4  ;;  %v747_v6 = vsel %vm3156_vm4, %v2586_v7, %v746_v59  ;;  %v411_v40 = vshll.u32 %v3562_v31, 16 }
  0x76   : > { %v750_v20 = vsel %vm3156_vm4, %v748_v13, %v749_v14  ;;  %v1032_v24 = vunpack.c.l.b16 %v747_v6 }
  0x77   : > { %v390_v63 = vsel %vm3172_vm5, %v385_v44, %v389_v41  ;;  %v1033_v25 = vunpack.c.l.b16 %v750_v20  ;;  %v415_v41 = vshrl.u32 %v3562_v31, 16  ;;  %v413_v50 = vrot.slane %v411_v40, 5  ;;  %v3593_v44 = vld [vmem:[%s3147_s9 + $0x7c] sm:$0xf] }
  0x78   : > { %1129 = vrot.lane.b32.xlu2 %v3426_v18, %s3056_s10  ;;  %v952_v16 = vunpack.c.l.b16 %v390_v63  ;;  %v421_v63 = vshll.u32 %v3585_v52, 16  ;;  %v531_v13 = vshll.u32 %v3593_v44, 16  ;;  %v535_v14 = vshrl.u32 %v3593_v44, 16 }
  0x79   : > { %v3570_v36 = vpack.c.b16 %v1033_v25, %v1032_v24  ;;  %v417_v56 = vrot.slane %v415_v41, 4 }
  0x7a   : > { %v423_v6 = vrot.slane %v421_v63, 5  ;;  %v756_v63 = vrot.slane %v3585_v52, 5 }
  0x7c   : > { %1094 = vrot.lane.b32.xlu0 %v3435_v26, %s3058_s12 }
  0x7d   : > { %1164 = vrot.lane.b32.xlu1 %v3444_v28, %s3060_s14 }
  0x80   : > { %1296 = vrot.lane.b32.xlu2 %v3446_v39, %s3063_s17 }
  0x82   : > { %v3494_v22 = vpop.permute.xlu2 %1177 }
  0x84   : > { %1261 = vrot.lane.b32.xlu0 %v3467_v54, %s3062_s16 }
  0x85   : > { %1234 = vrot.lane.b32.xlu1 %v3475_v4, %s3057_s11 }
  0x88   : > { %996 = vrot.lane.b32.xlu2 %v3240_v61, %s3061_s15  ;;  %v2776_v61 = vld [vmem:[%s5079_s1 + $0x10] sm:$0xff] }
  0x89   : > { %1701 = vmatpush.bf16.msra.mxu0 %v2776_v61  ;;  %2798 = vmatpush.bf16.msra.mxu2 %v2776_v61 }
  0x8a   : > { %2799 = vmatpush.bf16.msra.mxu3 %v2776_v61  ;;  %2797 = vmatpush.bf16.msra.mxu1 %v2776_v61  ;;  %v407_v61 = vrot.slane %v405_v62, 5 }
  0x8b   : > { %v1108_v48 = vpop.permute.xlu1 %1107 }
  0x8c   : > { %1199 = vrot.lane.b32.xlu0 %v3503_v32, %s3059_s13  ;;  %v3522_v10 = vpop.permute.xlu2 %1084 }
  0x8d   : > { %1076 = vrot.lane.b32.xlu1 %v3284_v34, %s3058_s12  ;;  %v395_v34 = vrot.slane %v394_v51, 4  ;;  %1702 = vmatpush.bf16.msra.mxu0 %v2775_v23 }
  0x8e   : > { %2801 = vmatpush.bf16.msra.mxu2 %v2775_v23  ;;  %2802 = vmatpush.bf16.msra.mxu3 %v2775_v23 }
  0x8f   : > { %2800 = vmatpush.bf16.msra.mxu1 %v2775_v23  ;;  %v400_v3 = vsel %vm3172_vm5, %v395_v34, %v399_v57  ;;  %v3590_v23 = vld [vmem:[%s3147_s9 + $0x78] sm:$0xf] }
  0x90   : > { %1304 = vrot.lane.b32.xlu2 %v3518_v49, %s3063_s17  ;;  %v953_v17 = vunpack.c.l.b16 %v400_v3  ;;  %v522_v3 = vshrl.u32 %v3590_v23, 16  ;;  %v525_v7 = vshll.u32 %v3590_v23, 16 }
  0x91   : > { %1703 = vmatpush.bf16.msra.mxu0 %v2774_v60 }
  0x92   : > { %2804 = vmatpush.bf16.msra.mxu2 %v2774_v60  ;;  %2805 = vmatpush.bf16.msra.mxu3 %v2774_v60  ;;  %v3554_v21 = vpack.c.b16 %v953_v17, %v952_v16  ;;  %v524_v20 = vrot.slane %v522_v3, 4  ;;  %v527_v25 = vrot.slane %v525_v7, 5 }
  0x93   : > { %2803 = vmatpush.bf16.msra.mxu1 %v2774_v60  ;;  %v418_v60 = vor.u32 %v417_v56, %v413_v50 }
  0x94   : > { %1269 = vrot.lane.b32.xlu0 %v3529_v53, %s3062_s16 }
  0x95   : > { %1146 = vrot.lane.b32.xlu1 %v3359_v0, %s3060_s14  ;;  %v1073_v15 = vpop.permute.xlu0 %1072  ;;  %v419_v17 = vrot.slane %v418_v60, 4 }
  0x97   : > { %v424_v41 = vsel %vm3172_vm5, %v419_v17, %v423_v6  ;;  %v3658_v6 = vld [vmem:[%s3147_s9 + $0x78] sm:$0xff] }
  0x98   : > { %1181 = vrot.lane.b32.xlu2 %v3374_v12, %s3059_s13 }
  0x99   : > { %v3546_v19 = vpop.permute.xlu2 %1154 }
  0x9c   : > { %1111 = vrot.lane.b32.xlu0 %v3372_v1, %s3056_s10  ;;  %v1143_v55 = vpop.permute.xlu1 %1142 }
  0x9d   : > { %1008 = vrot.lane.b32.xlu1 %v3309_v46, %s3061_s15  ;;  %v402_v46 = vshrl.u32 %v3559_v58, 16 }
  0x9f   : > { %v404_v45 = vrot.slane %v402_v46, 4  ;;  %v3616_v46 = vld [vmem:[%s3147_s9 + $0x80] sm:$0x1] }
  0xa0   : > { %1251 = vrot.lane.b32.xlu2 %v3554_v21, %s3062_s16 }
  0xa1   : > { %v993_v1 = vpop.permute.xlu0 %992  ;;  %v408_v59 = vor.u32 %v407_v61, %v404_v45  ;;  %v3628_v45 = vld [vmem:[%s3147_s9 + $0x48] sm:$0xff]  ;;  %v528_v61 = vor.u32 %v527_v25, %v524_v20  ;;  %v788_v25 = vrot.slane %v3593_v44, 5  ;;  %v2592_v44 = vrot.slane %v3590_v23, 9 }
  0xa2   : > { %v3572_v37 = vpop.permute.xlu2 %1259  ;;  %v1317_v42 = vsel %vm1314_vm6, %v2756_v35, %v993_v1  ;;  %v533_v35 = vrot.slane %v531_v13, 5  ;;  %v3613_v1 = vld [vmem:[%s3147_s9 + $0x3c] sm:$0xff] }
  0xa3   : > { %v1365_v27 = vsel %vm1363_vm7, %v1317_v42, %v1073_v15  ;;  %v409_v16 = vrot.slane %v408_v59, 4  ;;  %v529_v13 = vrot.slane %v528_v61, 4  ;;  %v790_v61 = vrot.slane %v788_v25, 4 }
  0xa4   : > { %1216 = vrot.lane.b32.xlu0 %v3567_v33, %s3057_s11  ;;  %v1398_v34 = vsel %vm1396_vm8, %v1365_v27, %v1108_v48  ;;  %v541_v27 = vshll.u32 %v3616_v46, 16  ;;  %v789_v23 = vsel %vm3156_vm4, %v2592_v44, %v788_v25  ;;  %v268_v25 = vld [vmem:[%s3147_s9 + $0xb0] sm:$0x1] }
  0xa5   : > { %1286 = vrot.lane.b32.xlu1 %v3570_v36, %s3063_s17  ;;  %v1431_v48 = vsel %vm1429_vm9, %v1398_v34, %v1143_v55  ;;  %v537_v55 = vrot.slane %v535_v14, 4  ;;  %v414_v40 = vsel %vm3172_vm5, %v409_v16, %v413_v50  ;;  %v534_v20 = vsel %vm3172_vm5, %v529_v13, %v533_v35 }
  0xa6   : > { %v1464_v24 = vsel %vm1462_vm10, %v1431_v48, %v3494_v22  ;;  %v753_v22 = vrot.slane %v3562_v31, 5  ;;  %v954_v50 = vunpack.c.l.b16 %v414_v40  ;;  %v955_v31 = vunpack.c.l.b16 %v424_v41 }
  0xa7   : > { %v1248_v51 = vpop.permute.xlu1 %1247  ;;  %v1497_v42 = vsel %vm1495_vm11, %v1464_v24, %v3449_v11  ;;  %v538_v56 = vor.u32 %v537_v55, %v533_v35  ;;  %v2587_v11 = vrot.slane %v3559_v58, 9  ;;  %v543_v14 = vrot.slane %v541_v27, 5 }
  0xa8   : > { %1000 = vrot.lane.b32.xlu2 %v3554_v21, %s3061_s15  ;;  %v1530_v34 = vsel %vm1528_vm12, %v1497_v42, %v1248_v51  ;;  %v755_v60 = vrot.slane %v753_v22, 4  ;;  %v3644_v48 = vpack.c.b16 %v955_v31, %v954_v50  ;;  %v3679_v31 = vld [vmem:[%s3147_s9 + $0xa8] sm:$0xf] }
  0xa9   : > { %v539_v51 = vrot.slane %v538_v56, 4  ;;  %v754_v52 = vsel %vm3156_vm4, %v2587_v11, %v753_v22  ;;  %v964_v22 = vunpack.c.l.b16 %v534_v20  ;;  %v791_v56 = vrot.slane %v3616_v46, 5 }
  0xaa   : > { %v3596_v57 = vpop.permute.xlu2 %1074  ;;  %v757_v16 = vsel %vm3156_vm4, %v755_v60, %v756_v63  ;;  %v618_v11 = vshrl.u32 %v3679_v31, 16  ;;  %v621_v60 = vshll.u32 %v3679_v31, 16 }
  0xab   : > { %v544_v24 = vsel %vm3172_vm5, %v539_v51, %v543_v14  ;;  %v792_v46 = vsel %vm3156_vm4, %v790_v61, %v791_v56  ;;  %v1044_v14 = vunpack.c.l.b16 %v789_v23 }
  0xac   : > { %1088 = vrot.lane.b32.xlu0 %v3332_v30, %s3058_s12  ;;  %v965_v42 = vunpack.c.l.b16 %v544_v24 }
  0xad   : > { %1080 = vrot.lane.b32.xlu1 %v3570_v36, %s3058_s12 }
  0xae   : > { %v1005_v15 = vpop.permute.xlu0 %1004 }
  0xaf   : > { %v1120_v30 = vpop.permute.xlu1 %1119  ;;  %v1335_v7 = vsel %vm1314_vm6, %v3628_v45, %v1005_v15 }
  0xb0   : > { %1158 = vrot.lane.b32.xlu2 %v3467_v54, %s3060_s14  ;;  %v1377_v15 = vsel %vm1363_vm7, %v1335_v7, %v3522_v10  ;;  %v1034_v10 = vunpack.c.l.b16 %v754_v52  ;;  %v1045_v52 = vunpack.c.l.b16 %v792_v46 }
  0xb1   : > { %v1410_v17 = vsel %vm1396_vm8, %v1377_v15, %v1120_v30  ;;  %v1035_v30 = vunpack.c.l.b16 %v757_v16  ;;  %v620_v16 = vrot.slane %v618_v11, 4  ;;  %v623_v15 = vrot.slane %v621_v60, 5  ;;  %v3728_v11 = vld [vmem:[%s3147_s9 + $0xa8] sm:$0xff] }
  0xb2   : > { %v3618_v62 = vpop.permute.xlu2 %1179  ;;  %v1443_v40 = vsel %vm1429_vm9, %v1410_v17, %v3546_v19  ;;  %v3682_v19 = vld [vmem:[%s3147_s9 + $0xac] sm:$0xf] }
  0xb3   : > { %v3674_v27 = vpack.c.b16 %v1035_v30, %v1034_v10  ;;  %v627_v63 = vshll.u32 %v3682_v19, 16  ;;  %v2983_v10 = vld [vmem:[%s3147_s9 + $0xc] sm:$0xff]  ;;  %v3712_v30 = vpack.c.b16 %v1045_v52, %v1044_v14  ;;  %v816_v23 = vrot.slane %v3682_v19, 5 }
  0xb4   : > { %1123 = vrot.lane.b32.xlu0 %v3413_v2, %s3056_s10 }
  0xb5   : > { %1115 = vrot.lane.b32.xlu1 %v3613_v1, %s3056_s10  ;;  %v629_v17 = vrot.slane %v627_v63, 5 }
  0xb6   : > { %v1283_v59 = vpop.permute.xlu0 %1282 }
  0xb7   : > { %v1563_v2 = vsel %vm1561_vm13, %v1530_v34, %v1283_v59  ;;  %v1225_v3 = vpop.permute.xlu1 %1224  ;;  %v3687_v59 = vpack.c.b16 %v965_v42, %v964_v22  ;;  %v637_v22 = vshll.u32 %v268_v25, 16 }
  0xb8   : > { %2704 = vmatmul.msk.bf16.vlgmr.msra.gmra.mxu0 %vm1594_vm14, %v1563_v2  ;;  %1193 = vrot.lane.b32.xlu2 %v3446_v39, %s3059_s13  ;;  %v631_v2 = vshrl.u32 %v3682_v19, 16 }
  0xb9   : > { %v639_v56 = vrot.slane %v637_v22, 5 }
  0xba   : > { %v3646_v58 = vpop.permute.xlu2 %1249  ;;  %v633_v20 = vrot.slane %v631_v2, 4  ;;  %v2596_v2 = vrot.slane %v3679_v31, 9 }
  0xbc   : > { %1016 = vrot.lane.b32.xlu0 %v3444_v28, %s3061_s15 }
  0xbd   : > { %1150 = vrot.lane.b32.xlu1 %v3644_v48, %s3060_s14 }
  0xbe   : > { %v1190_v55 = vpop.permute.xlu0 %1189 }
  0xbf   : > { %v995_v41 = vpop.permute.xlu1 %994  ;;  %v1476_v35 = vsel %vm1462_vm10, %v1443_v40, %v1190_v55  ;;  %v624_v55 = vor.u32 %v623_v15, %v620_v16  ;;  %v634_v40 = vor.u32 %v633_v20, %v629_v17 }
  0xc0   : > { %1228 = vrot.lane.b32.xlu2 %v3658_v6, %s3057_s11  ;;  %v1509_v34 = vsel %vm1495_vm11, %v1476_v35, %v1225_v3 }
  0xc1   : > { %v1542_v7 = vsel %vm1528_vm12, %v1509_v34, %v3572_v37  ;;  %v1320_v37 = vsel %vm1314_vm6, %v2983_v10, %v995_v41  ;;  %v635_v41 = vrot.slane %v634_v40, 4 }
  0xc2   : > { %v3676_v50 = vpop.permute.xlu2 %1121  ;;  %v1367_v35 = vsel %vm1363_vm7, %v1320_v37, %v3596_v57 }
  0xc3   : > { %v640_v60 = vsel %vm3172_vm5, %v635_v41, %v639_v56 }
  0xc4   : > { %1096 = vrot.lane.b32.xlu0 %v3503_v32, %s3058_s12  ;;  %v973_v16 = vunpack.c.l.b16 %v640_v60 }
  0xc5   : > { %1185 = vrot.lane.b32.xlu1 %v3674_v27, %s3059_s13 }
  0xc6   : > { %v1295_v3 = vpop.permute.xlu0 %1294 }
  0xc7   : > { %v1575_v13 = vsel %vm1561_vm13, %v1542_v7, %v1295_v3  ;;  %v1145_v51 = vpop.permute.xlu1 %1144  ;;  %v818_v3 = vrot.slane %v816_v23, 4  ;;  %v819_v7 = vrot.slane %v268_v25, 5 }
  0xc8   : > { %2710 = vmatmul.msk.bf16.vlgmr.msra.gmra.mxu2 %vm1594_vm14, %v1575_v13  ;;  %1263 = vrot.lane.b32.xlu2 %v3687_v59, %s3062_s16 }
  0xc9   : > { %v820_v31 = vsel %vm3156_vm4, %v818_v3, %v819_v7 }
  0xca   : > { %v3705_v24 = vpop.permute.xlu2 %1191  ;;  %v1053_v25 = vunpack.c.l.b16 %v820_v31 }
  0xcc   : > { %1131 = vrot.lane.b32.xlu0 %v3475_v4, %s3056_s10  ;;  %v625_v4 = vrot.slane %v624_v55, 4 }
  0xcd   : > { %1220 = vrot.lane.b32.xlu1 %v3628_v45, %s3057_s11 }
  0xce   : > { %v1110_v42 = vpop.permute.xlu0 %1109  ;;  %v630_v57 = vsel %vm3172_vm5, %v625_v4, %v629_v17 }
  0xcf   : > { %v1007_v44 = vpop.permute.xlu1 %1006  ;;  %v1400_v61 = vsel %vm1396_vm8, %v1367_v35, %v1110_v42  ;;  %v972_v52 = vunpack.c.l.b16 %v630_v57  ;;  %v3769_v35 = vld [vmem:[%s3147_s9 + $0x54] sm:$0xff] }
  0xd0   : > { %1298 = vrot.lane.b32.xlu2 %v3712_v30, %s3063_s17  ;;  %v1433_v46 = vsel %vm1429_vm9, %v1400_v61, %v1145_v51  ;;  %v1338_v61 = vsel %vm1314_vm6, %v3769_v35, %v1007_v44 }
  0xd1   : > { %v1466_v63 = vsel %vm1462_vm10, %v1433_v46, %v3618_v62  ;;  %v817_v62 = vsel %vm3156_vm4, %v2596_v2, %v816_v23 }
  0xd2   : > { %v3721_v34 = vpop.permute.xlu2 %1129  ;;  %v1052_v20 = vunpack.c.l.b16 %v817_v62 }
  0xd4   : > { %1166 = vrot.lane.b32.xlu0 %v3529_v53, %s3060_s14  ;;  %v3758_v55 = vpack.c.b16 %v1053_v25, %v1052_v20 }
  0xd5   : > { %1255 = vrot.lane.b32.xlu1 %v3268_v29, %s3062_s16 }
  0xd6   : > { %v1215_v19 = vpop.permute.xlu0 %1214 }
  0xd7   : > { %v1499_v13 = vsel %vm1495_vm11, %v1466_v63, %v1215_v19  ;;  %v1285_v51 = vpop.permute.xlu1 %1284  ;;  %v3793_v19 = vld [vmem:[%s3147_s9 + $0x84] sm:$0xff] }
  0xd8   : > { %v1532_v14 = vsel %vm1528_vm12, %v1499_v13, %v3646_v58  ;;  %1236 = vrot.lane.b32.xlu2 %v3728_v11, %s3057_s11  ;;  %v3752_v58 = vpack.c.b16 %v973_v16, %v972_v52 }
  0xd9   : > { %v1565_v15 = vsel %vm1561_vm13, %v1532_v14, %v1285_v51 }
  0xda   : > { %v1297_v17 = vpop.permute.xlu2 %1296  ;;  %2705 = vmatmul.msk.bf16.gmra.mxu0 %vm1594_vm14, %v1565_v15 }
  0xdc   : > { %1201 = vrot.lane.b32.xlu0 %v3518_v49, %s3059_s13 }
  0xdd   : > { %998 = vrot.lane.b32.xlu1 %v3359_v0, %s3061_s15 }
  0xde   : > { %v1087_v10 = vpop.permute.xlu0 %1086 }
  0xdf   : > { %v1015_v37 = vpop.permute.xlu1 %1014  ;;  %v1379_v4 = vsel %vm1363_vm7, %v1338_v61, %v1087_v10 }
  0xe0   : > { %1271 = vrot.lane.b32.xlu2 %v3752_v58, %s3062_s16  ;;  %v1412_v23 = vsel %vm1396_vm8, %v1379_v4, %v3676_v50  ;;  %v269_v4 = vld [vmem:[%s3147_s9 + $0xb4] sm:$0xf] }
  0xe2   : > { %v997_v40 = vpop.permute.xlu2 %996 }
  0xe4   : > { %1290 = vrot.lane.b32.xlu0 %v3229_v47, %s3063_s17 }
  0xe5   : > { %1306 = vrot.lane.b32.xlu1 %v3758_v55, %s3063_s17 }
  0xe6   : > { %v1157_v22 = vpop.permute.xlu0 %1156 }
  0xe7   : > { %v1227_v42 = vpop.permute.xlu1 %1226 }
  0xe8   : > { %1113 = vrot.lane.b32.xlu2 %v3567_v33, %s3056_s10 }
  0xea   : > { %v1305_v0 = vpop.permute.xlu2 %1304 }
  0xec   : > { %1078 = vrot.lane.b32.xlu0 %v3374_v12, %s3058_s12  ;;  %v1445_v12 = vsel %vm1429_vm9, %v1412_v23, %v1157_v22  ;;  %v642_v23 = vshrl.u32 %v269_v4, 16 }
  0xed   : > { %1183 = vrot.lane.b32.xlu1 %v3570_v36, %s3059_s13  ;;  %v1478_v36 = vsel %vm1462_vm10, %v1445_v12, %v3705_v24  ;;  %v1350_v24 = vsel %vm1314_vm6, %v3793_v19, %v1015_v37  ;;  %v645_v12 = vshll.u32 %v269_v4, 16 }
  0xee   : > { %v1095_v41 = vpop.permute.xlu0 %1094  ;;  %v1511_v44 = vsel %vm1495_vm11, %v1478_v36, %v1227_v42 }
  0xef   : > { %v1165_v56 = vpop.permute.xlu1 %1164  ;;  %v1387_v2 = vsel %vm1363_vm7, %v1350_v24, %v1095_v41  ;;  %v270_v41 = vld [vmem:[%s3147_s9 + $0xb8] sm:$0xf]  ;;  %v647_v24 = vrot.slane %v645_v12, 5 }
  0xf0   : > { %1218 = vrot.lane.b32.xlu2 %v3613_v1, %s3057_s11  ;;  %v655_v36 = vshrl.u32 %v270_v41, 16 }
  0xf2   : > { %v1182_v46 = vpop.permute.xlu2 %1181 }
  0xf4   : > { %1148 = vrot.lane.b32.xlu0 %v3554_v21, %s3060_s14 }
  0xf5   : > { %1253 = vrot.lane.b32.xlu1 %v3644_v48, %s3062_s16 }
  0xf6   : > { %v1262_v57 = vpop.permute.xlu0 %1261 }
  0xf7   : > { %v1544_v60 = vsel %vm1528_vm12, %v1511_v44, %v1262_v57  ;;  %v1235_v63 = vpop.permute.xlu1 %1234  ;;  %v823_v57 = vrot.slane %v270_v41, 5 }
  0xf8   : > { %v1577_v50 = vsel %vm1561_vm13, %v1544_v60, %v1297_v17  ;;  %1090 = vrot.lane.b32.xlu2 %v3446_v39, %s3058_s12  ;;  %v1420_v39 = vsel %vm1396_vm8, %v1387_v2, %v3721_v34  ;;  %v2985_v17 = vld [vmem:[%s3147_s9 + $0x18] sm:$0xff] }
  0xf9   : > { %2711 = vmatmul.msk.bf16.gmra.mxu2 %vm1594_vm14, %v1577_v50  ;;  %v1453_v13 = vsel %vm1429_vm9, %v1420_v39, %v1165_v56  ;;  %v1323_v62 = vsel %vm1314_vm6, %v2985_v17, %v997_v40  ;;  %v271_v60 = vld [vmem:[%s3147_s9 + $0xbc] sm:$0x1]  ;;  %v2597_v50 = vrot.slane %v269_v4, 9 }
  0xfa   : > { %v1252_v21 = vpop.permute.xlu2 %1251 }
  0xfc   : > { %1010 = vrot.lane.b32.xlu0 %v3467_v54, %s3061_s15 }
  0xfd   : > { %1002 = vrot.lane.b32.xlu1 %v3644_v48, %s3061_s15 }
  0xfe   : > { %v1200_v3 = vpop.permute.xlu0 %1199 }
  0xff   : > { %v1077_v7 = vpop.permute.xlu1 %1076  ;;  %v1486_v51 = vsel %vm1462_vm10, %v1453_v13, %v1200_v3  ;;  %v657_v3 = vrot.slane %v655_v36, 4  ;;  %v825_v13 = vrot.slane %v823_v57, 4 }
 0x100   : > { %1125 = vrot.lane.b32.xlu2 %v3658_v6, %s3056_s10  ;;  %v1519_v48 = vsel %vm1495_vm11, %v1486_v51, %v1235_v63  ;;  %v1369_v20 = vsel %vm1363_vm7, %v1323_v62, %v1077_v7  ;;  %v2986_v63 = vld [vmem:[%s3147_s9 + $0x60] sm:$0xff]  ;;  %v826_v51 = vrot.slane %v271_v60, 5 }
 0x102   : > { %v3808_v54 = vpop.permute.xlu2 %1000 }
 0x104   : > { %1288 = vrot.lane.b32.xlu0 %v3674_v27, %s3063_s17 }
 0x105   : > { %1160 = vrot.lane.b32.xlu1 %v3687_v59, %s3060_s14 }
 0x106   : > { %v1270_v14 = vpop.permute.xlu0 %1269 }
 0x107   : > { %v1552_v52 = vsel %vm1528_vm12, %v1519_v48, %v1270_v14  ;;  %v1147_v16 = vpop.permute.xlu1 %1146 }
 0x108   : > { %v1585_v34 = vsel %vm1561_vm13, %v1552_v52, %v1305_v0  ;;  %1018 = vrot.lane.b32.xlu2 %v3529_v53, %s3061_s15  ;;  %v824_v52 = vsel %vm3156_vm4, %v2597_v50, %v823_v57  ;;  %v272_v57 = vld [vmem:[%s3147_s9 + $0xc0] sm:$0xf] }
 0x109   : > { %2715 = vmatmul.msk.bf16.vlgmr.msra.gmra.mxu3 %vm1594_vm14, %v1585_v34  ;;  %v3871_v34 = vld [vmem:[%s3147_s9 + $0xb4] sm:$0xff] }
 0x10a   : > { %v1159_v15 = vpop.permute.xlu2 %1158 }
 0x10c   : > { %1082 = vrot.lane.b32.xlu0 %v3674_v27, %s3058_s12 }
 0x10d   : > { %1195 = vrot.lane.b32.xlu1 %v3712_v30, %s3059_s13 }
 0x10e   : > { %v1112_v31 = vpop.permute.xlu0 %1111 }
 0x10f   : > { %v1009_v25 = vpop.permute.xlu1 %1008  ;;  %v1402_v10 = vsel %vm1396_vm8, %v1369_v20, %v1112_v31  ;;  %v661_v31 = vshll.u32 %v271_v60, 16  ;;  %v273_v60 = vld [vmem:[%s3147_s9 + $0xc4] sm:$0xf] }
 0x110   : > { %1098 = vrot.lane.b32.xlu2 %v3518_v49, %s3058_s12  ;;  %v1435_v37 = vsel %vm1429_vm9, %v1402_v10, %v1147_v16  ;;  %v827_v10 = vsel %vm3156_vm4, %v825_v13, %v826_v51  ;;  %v838_v50 = vshll.u32 %v273_v60, 16  ;;  %v274_v13 = vld [vmem:[%s3147_s9 + $0xc8] sm:$0x1] }
 0x111   : > { %v1468_v27 = vsel %vm1462_vm10, %v1435_v37, %v1182_v46  ;;  %v651_v46 = vshll.u32 %v270_v41, 16 }
 0x112   : > { %v1194_v53 = vpop.permute.xlu2 %1193 }
 0x113   : > { %v653_v2 = vrot.slane %v651_v46, 5 }
 0x114   : > { %1117 = vrot.lane.b32.xlu0 %v3628_v45, %s3056_s10 }
 0x115   : > { %1230 = vrot.lane.b32.xlu1 %v3793_v19, %s3057_s11  ;;  %v658_v62 = vor.u32 %v657_v3, %v653_v2  ;;  %v840_v3 = vrot.slane %v838_v50, 5 }
 0x116   : > { %v1217_v40 = vpop.permute.xlu0 %1216 }
 0x117   : > { %v1501_v22 = vsel %vm1495_vm11, %v1468_v27, %v1217_v40  ;;  %v1287_v42 = vpop.permute.xlu1 %1286  ;;  %v1054_v27 = vunpack.c.l.b16 %v824_v52 }
 0x118   : > { %v1534_v0 = vsel %vm1528_vm12, %v1501_v22, %v1252_v21  ;;  %1133 = vrot.lane.b32.xlu2 %v3728_v11, %s3056_s10  ;;  %v644_v21 = vrot.slane %v642_v23, 4  ;;  %v659_v22 = vrot.slane %v658_v62, 4 }
 0x119   : > { %v1567_v49 = vsel %vm1561_vm13, %v1534_v0, %v1287_v42  ;;  %v663_v42 = vrot.slane %v661_v31, 5 }
 0x11a   : > { %v1229_v61 = vpop.permute.xlu2 %1228  ;;  %2706 = vmatmul.msk.bf16.gmra.mxu0 %vm1594_vm14, %v1567_v49  ;;  %v648_v17 = vor.u32 %v647_v24, %v644_v21  ;;  %v842_v21 = vshrl.u32 %v273_v60, 16 }
 0x11c   : > { %1152 = vrot.lane.b32.xlu0 %v3268_v29, %s3060_s14  ;;  %v1341_v29 = vsel %vm1314_vm6, %v2986_v63, %v1009_v25  ;;  %v649_v40 = vrot.slane %v648_v17, 4 }
 0x11d   : > { %1265 = vrot.lane.b32.xlu1 %v3397_v9, %s3062_s16 }
 0x11e   : > { %v1089_v45 = vpop.permute.xlu0 %1088 }
 0x11f   : > { %v3849_v56 = vpop.permute.xlu1 %1080  ;;  %v1381_v7 = vsel %vm1363_vm7, %v1341_v29, %v1089_v45  ;;  %v664_v45 = vsel %vm3172_vm5, %v659_v22, %v663_v42  ;;  %v829_v29 = vshrl.u32 %v272_v57, 16  ;;  %v2987_v22 = vld [vmem:[%s3147_s9 + $0x90] sm:$0xff] }
 0x120   : > { %1168 = vrot.lane.b32.xlu2 %v3752_v58, %s3060_s14  ;;  %v975_v23 = vunpack.c.l.b16 %v664_v45 }
 0x121   : > { %v831_v24 = vrot.slane %v829_v29, 4 }
 0x122   : > { %v1264_v44 = vpop.permute.xlu2 %1263 }
 0x124   : > { %1187 = vrot.lane.b32.xlu0 %v3229_v47, %s3059_s13 }
 0x125   : > { %1300 = vrot.lane.b32.xlu1 %v3435_v26, %s3063_s17 }
 0x126   : > { %v1124_v39 = vpop.permute.xlu0 %1123 }
 0x127   : > { %v1414_v48 = vsel %vm1396_vm8, %v1381_v7, %v1124_v39  ;;  %v3862_v14 = vpop.permute.xlu1 %1115  ;;  %v844_v7 = vrot.slane %v842_v21, 4 }
 0x128   : > { %v1447_v47 = vsel %vm1429_vm9, %v1414_v48, %v1159_v15  ;;  %1203 = vrot.lane.b32.xlu2 %v3758_v55, %s3059_s13  ;;  %v848_v48 = vshll.u32 %v274_v13, 16 }
 0x129   : > { %v1480_v16 = vsel %vm1462_vm10, %v1447_v47, %v1194_v53  ;;  %v1055_v53 = vunpack.c.l.b16 %v827_v10  ;;  %v845_v51 = vor.u32 %v844_v7, %v840_v3 }
 0x12a   : > { %v1299_v20 = vpop.permute.xlu2 %1298  ;;  %v1513_v25 = vsel %vm1495_vm11, %v1480_v16, %v1229_v61  ;;  %v850_v62 = vrot.slane %v848_v48, 5 }
 0x12b   : > { %v1546_v15 = vsel %vm1528_vm12, %v1513_v25, %v1264_v44  ;;  %v3885_v61 = vpack.c.b16 %v1055_v53, %v1054_v27  ;;  %v846_v17 = vrot.slane %v845_v51, 4  ;;  %v2598_v27 = vrot.slane %v272_v57, 9  ;;  %v277_v51 = vld [vmem:[%s3147_s9 + $0xd4] sm:$0x1] }
 0x12c   : > { %1222 = vrot.lane.b32.xlu0 %v3769_v35, %s3057_s11  ;;  %v1579_v37 = vsel %vm1561_vm13, %v1546_v15, %v1299_v20  ;;  %v654_v35 = vsel %vm3172_vm5, %v649_v40, %v653_v2  ;;  %v857_v20 = vrot.slane %v273_v60, 5  ;;  %v860_v40 = vrot.slane %v274_v13, 5 }
 0x12d   : > { %2712 = vmatmul.msk.bf16.gmra.mxu2 %vm1594_vm14, %v1579_v37  ;;  %1238 = vrot.lane.b32.xlu1 %v3871_v34, %s3057_s11  ;;  %v974_v41 = vunpack.c.l.b16 %v654_v35  ;;  %v851_v15 = vsel %vm3172_vm5, %v846_v17, %v850_v62  ;;  %v2988_v62 = vld [vmem:[%s3147_s9 + $0x24] sm:$0xff] }
 0x12e   : > { %v1017_v0 = vpop.permute.xlu0 %1016  ;;  %v859_v53 = vrot.slane %v857_v20, 4 }
 0x12f   : > { %v1151_v49 = vpop.permute.xlu1 %1150  ;;  %v3895_v46 = vpack.c.b16 %v975_v23, %v974_v41  ;;  %v1353_v47 = vsel %vm1314_vm6, %v3426_v18, %v1017_v0  ;;  %v1140_v0 = vunpack.c.l.b16 %v851_v15 }
 0x130   : > { %1292 = vrot.lane.b32.xlu2 %v3313_v8, %s3063_s17 }
 0x132   : > { %v1237_v4 = vpop.permute.xlu2 %1236 }
 0x134   : > { %1257 = vrot.lane.b32.xlu0 %v3279_v43, %s3062_s16 }
 0x135   : > { %1308 = vrot.lane.b32.xlu1 %v3885_v61, %s3063_s17 }
 0x136   : > { %v1097_v8 = vpop.permute.xlu0 %1096 }
 0x137   : > { %v1186_v12 = vpop.permute.xlu1 %1185 }
 0x138   : > { %1012 = vrot.lane.b32.xlu2 %v3687_v59, %s3061_s15  ;;  %v832_v59 = vshll.u32 %v272_v57, 16 }
 0x13a   : > { %v3899_v36 = vpop.permute.xlu2 %1271  ;;  %v834_v2 = vrot.slane %v832_v59, 5  ;;  %v276_v59 = vld [vmem:[%s3147_s9 + $0xd0] sm:$0xf] }
 0x13b   : > { %v876_v7 = vshrl.u32 %v276_v59, 16 }
 0x13c   : > { %1273 = vrot.lane.b32.xlu0 %v3895_v46, %s3062_s16 }
 0x13d   : > { %1127 = vrot.lane.b32.xlu1 %v3793_v19, %s3056_s10 }
 0x13e   : > { %v1132_v43 = vpop.permute.xlu0 %1131 }
 0x13f   : > { %v1221_v44 = vpop.permute.xlu1 %1220 }
 0x140   : > { %1162 = vrot.lane.b32.xlu2 %v3397_v9, %s3060_s14  ;;  %v835_v9 = vor.u32 %v834_v2, %v831_v24 }
 0x142   : > { %v3909_v63 = vpop.permute.xlu2 %1113  ;;  %v836_v16 = vrot.slane %v835_v9, 4 }
 0x144   : > { %1092 = vrot.lane.b32.xlu0 %v3712_v30, %s3058_s12  ;;  %v841_v10 = vsel %vm3172_vm5, %v836_v16, %v840_v3  ;;  %v872_v3 = vshll.u32 %v276_v59, 16  ;;  %v894_v16 = vrot.slane %v277_v51, 5 }
 0x145   : > { %1197 = vrot.lane.b32.xlu1 %v3435_v26, %s3059_s13  ;;  %v1329_v26 = vsel %vm1314_vm6, %v3567_v33, %v3808_v54  ;;  %v1139_v42 = vunpack.c.l.b16 %v841_v10 }
 0x146   : > { %v1167_v19 = vpop.permute.xlu0 %1166  ;;  %v1373_v18 = vsel %vm1363_vm7, %v1329_v26, %v3849_v56  ;;  %v874_v48 = vrot.slane %v872_v3, 5  ;;  %v878_v26 = vrot.slane %v876_v7, 4 }
 0x147   : > { %v1256_v39 = vpop.permute.xlu1 %1255  ;;  %v1406_v25 = vsel %vm1396_vm8, %v1373_v18, %v3862_v14 }
 0x148   : > { %1100 = vrot.lane.b32.xlu2 %v3758_v55, %s3058_s12  ;;  %v1389_v55 = vsel %vm1363_vm7, %v1353_v47, %v1097_v8  ;;  %v1439_v37 = vsel %vm1429_vm9, %v1406_v25, %v1151_v49  ;;  %v858_v8 = vsel %vm3156_vm4, %v2598_v27, %v857_v20 }
 0x14a   : > { %v3920_v30 = vpop.permute.xlu2 %1218 }
 0x14c   : > { %1020 = vrot.lane.b32.xlu0 %v3752_v58, %s3061_s15  ;;  %v1422_v58 = vsel %vm1396_vm8, %v1389_v55, %v1132_v43  ;;  %v1141_v43 = vpack.c.b16 %v1140_v0, %v1139_v42 }
 0x14d   : > { %1135 = vrot.lane.b32.xlu1 %v3871_v34, %s3056_s10  ;;  %v1455_v33 = vsel %vm1429_vm9, %v1422_v58, %v1167_v19  ;;  %v2772_v19 = vld [vmem:[%s3147_s9 + $0xc0] sm:$0xff] }
 0x14e   : > { %v1202_v52 = vpop.permute.xlu0 %1201 }
 0x14f   : > { %v3931_v31 = vpop.permute.xlu1 %998  ;;  %v1488_v54 = vsel %vm1462_vm10, %v1455_v33, %v1202_v52  ;;  %v882_v33 = vshll.u32 %v277_v51, 16 }
 0x150   : > { %1267 = vrot.lane.b32.xlu2 %v3444_v28, %s3062_s16  ;;  %v1472_v28 = vsel %vm1462_vm10, %v1439_v37, %v1186_v12  ;;  %v1521_v56 = vsel %vm1495_vm11, %v1488_v54, %v1237_v4  ;;  %v1326_v58 = vsel %vm1314_vm6, %v2988_v62, %v3931_v31 }
 0x151   : > { %v1505_v14 = vsel %vm1495_vm11, %v1472_v28, %v1221_v44  ;;  %v1554_v4 = vsel %vm1528_vm12, %v1521_v56, %v3899_v36  ;;  %v1174_v44 = vunpack.c.l.b16 %v858_v8  ;;  %v275_v36 = vld [vmem:[%s3147_s9 + $0xcc] sm:$0xf]  ;;  %v884_v37 = vrot.slane %v882_v33, 5 }
 0x152   : > { %v1538_v35 = vsel %vm1528_vm12, %v1505_v14, %v1256_v39  ;;  %v3954_v45 = vpop.permute.xlu2 %1090  ;;  %v863_v24 = vshrl.u32 %v275_v36, 16  ;;  %v866_v2 = vshll.u32 %v275_v36, 16  ;;  %v891_v39 = vrot.slane %v276_v59, 5  ;;  %v2773_v56 = vld [vmem:[%s3147_s9 + $0xcc] sm:$0xff] }
 0x153   : > { %v2599_v55 = vrot.slane %v275_v36, 9 }
 0x154   : > { %1232 = vrot.lane.b32.xlu0 %v2987_v22, %s3057_s11  ;;  %v865_v13 = vrot.slane %v863_v24, 4  ;;  %v868_v9 = vrot.slane %v866_v2, 5  ;;  %v893_v52 = vrot.slane %v891_v39, 4 }
 0x155   : > { %1302 = vrot.lane.b32.xlu1 %v3503_v32, %s3063_s17  ;;  %v861_v32 = vsel %vm3156_vm4, %v859_v53, %v860_v40  ;;  %v892_v25 = vsel %vm3156_vm4, %v2599_v55, %v891_v39  ;;  %v2990_v55 = vld [vmem:[%s3147_s9 + $0x9c] sm:$0xff] }
 0x156   : > { %v1291_v49 = vpop.permute.xlu0 %1290  ;;  %v1175_v57 = vunpack.c.l.b16 %v861_v32  ;;  %v869_v20 = vor.u32 %v868_v9, %v865_v13  ;;  %v895_v10 = vsel %vm3156_vm4, %v893_v52, %v894_v16  ;;  %v1279_v40 = vunpack.c.l.b16 %v892_v25 }
 0x157   : > { %v1571_v41 = vsel %vm1561_vm13, %v1538_v35, %v1291_v49  ;;  %v1307_v23 = vpop.permute.xlu1 %1306  ;;  %v1280_v28 = vunpack.c.l.b16 %v895_v10 }
 0x158   : > { %2708 = vmatmul.msk.bf16.vlgmr.msra.gmra.mxu1 %vm1594_vm14, %v1571_v41  ;;  %v1587_v12 = vsel %vm1561_vm13, %v1554_v4, %v1307_v23  ;;  %1205 = vrot.lane.b32.xlu2 %v3885_v61, %s3059_s13  ;;  %v1176_v29 = vpack.c.b16 %v1175_v57, %v1174_v44  ;;  %v870_v31 = vrot.slane %v869_v20, 4 }
 0x159   : > { %2716 = vmatmul.msk.bf16.gmra.mxu3 %vm1594_vm14, %v1587_v12  ;;  %v1281_v42 = vpack.c.b16 %v1280_v28, %v1279_v40 }
 0x15a   : > { %v3973_v21 = vpop.permute.xlu2 %1125 }
 0x15c   : > { %1170 = vrot.lane.b32.xlu0 %v3895_v46, %s3060_s14 }
 0x15d   : > { %1275 = vrot.lane.b32.xlu1 %v1141_v43, %s3062_s16 }
 0x15e   : > { %v1079_v60 = vpop.permute.xlu0 %1078 }
 0x15f   : > { %v1184_v50 = vpop.permute.xlu1 %1183  ;;  %v1371_v18 = vsel %vm1363_vm7, %v1326_v58, %v1079_v60  ;;  %v2989_v60 = vld [vmem:[%s3147_s9 + $0x6c] sm:$0xff] }
 0x160   : > { %1310 = vrot.lane.b32.xlu2 %v1176_v29, %s3063_s17  ;;  %v1404_v15 = vsel %vm1396_vm8, %v1371_v18, %v3909_v63  ;;  %v875_v63 = vsel %vm3172_vm5, %v870_v31, %v874_v48 }
 0x161   : > { %v1244_v49 = vunpack.c.l.b16 %v875_v63 }
 0x162   : > { %v1019_v54 = vpop.permute.xlu2 %1018 }
 0x164   : > { %1240 = vrot.lane.b32.xlu0 %v2772_v19, %s3057_s11 }
 0x165   : > { %1102 = vrot.lane.b32.xlu1 %v3885_v61, %s3058_s12  ;;  %v879_v61 = vor.u32 %v878_v26, %v874_v48  ;;  %s3012_s12 = scalar_lea.hbm %s5083_s5, 16 }
 0x166   : > { %v1149_v47 = vpop.permute.xlu0 %1148 }
 0x167   : > { %v1254_v17 = vpop.permute.xlu1 %1253  ;;  %v1437_v27 = vsel %vm1429_vm9, %v1404_v15, %v1149_v47  ;;  %v880_v53 = vrot.slane %v879_v61, 4 }
 0x168   : > { %1137 = vrot.lane.b32.xlu2 %v2772_v19, %s3056_s10  ;;  %v1470_v5 = vsel %vm1462_vm10, %v1437_v27, %v1184_v50 }
 0x169   : > { %v1503_v0 = vsel %vm1495_vm11, %v1470_v5, %v3920_v30 }
 0x16a   : > { %v1099_v35 = vpop.permute.xlu2 %1098  ;;  %v1536_v23 = vsel %vm1528_vm12, %v1503_v0, %v1254_v17 }
 0x16c   : > { %1022 = vrot.lane.b32.xlu0 %v3895_v46, %s3061_s15  ;;  %v885_v46 = vsel %vm3172_vm5, %v880_v53, %v884_v37  ;;  %s2753_s15 = sshll.u32 %s3115_s22, 3 }
 0x16d   : > { %1207 = vrot.lane.b32.xlu1 %v1176_v29, %s3059_s13  ;;  %v1245_v41 = vunpack.c.l.b16 %v885_v46  ;;  %s215_s13 = sand.u32 1, %s3046_s19   ;;  %s2512_s26 = scalar_lea.hbm %s5083_s5, %s2753_s15 }
 0x16e   : > { %v1011_v22 = vpop.permute.xlu0 %1010  ;;  %s2516_s23 = sshll.u32 %s2512_s26, 4  ;;  %s2502_s25 = scalar_lea.sflag [#allocation3], %s215_s13  ;;  %s2517_s23 = int_to_ptr.hbm [resolvable:$true] %s2516_s23 }
 0x16f   : > { %v1003_v14 = vpop.permute.xlu1 %1002  ;;  %v1246_v38 = vpack.c.b16 %v1245_v41, %v1244_v49  ;;  %v1344_v29 = vsel %vm1314_vm6, %v2989_v60, %v1011_v22  ;;  %s3006_s22 = sshra.s32 %s2517_s23, 4  ;;  %s3007_s22 = int_to_ptr.hbm [resolvable:$true] %s3006_s22 }
 0x170   : > { %1242 = vrot.lane.b32.xlu2 %v2773_v56, %s3057_s11  ;;  %v1383_v19 = vsel %vm1363_vm7, %v1344_v29, %v3954_v45  ;;  %v1332_v52 = vsel %vm1314_vm6, %v3613_v1, %v1003_v14  ;;  %s3008_s9 = scalar_lea.hbm %s3007_s22, 8  ;;  %p3013_p0 = scmp.lt.s32.totalorder %s3007_s22, %s5083_s5 }
 0x171   : > { %v1416_v2 = vsel %vm1396_vm8, %v1383_v19, %v3973_v21  ;;  %v1356_v21 = vsel %vm1314_vm6, %v2990_v55, %v1019_v54  ;;  %p3009_p11 = scmp.ne.s32.totalorder %s3007_s22, %s3008_s9  ;;  %p3014_p1 = scmp.lt.s32.totalorder %s3012_s12, %s3008_s9 }
 0x172   : > { %v1134_v30 = vpop.permute.xlu2 %1133  ;;  %v1391_v62 = vsel %vm1363_vm7, %v1356_v21, %v1099_v35  ;;  %v1735_v21 = vpop.f32.mrf.mxu2 }
 0x173   : > { %v1424_v25 = vsel %vm1396_vm8, %v1391_v62, %v1134_v30  ;;  %p3010_p12 = pnand %p3009_p11, %p3132_p5  ;;  %p3015_p2 = por %p3014_p1, %p3013_p0 }
 0x174   : > { %1172 = vrot.lane.b32.xlu0 %v1141_v43, %s3060_s14  ;;  %s2580_s14 = sshll.u32 %s215_s13, 3 }
 0x175   : > { %1312 = vrot.lane.b32.xlu1 %v1281_v42, %s3063_s17  ;;  %s217_s7 = scalar_lea.vmem [#allocation2], %s2580_s14  ;;  %p3011_p13 = pneg %p3010_p12 }
 0x176   : > { %v1289_v4 = vpop.permute.xlu0 %1288  ;;  %s2514_s8 = sshll.u32 %s217_s7, 4  ;;  %s2515_s8 = int_to_ptr.vmem [resolvable:$true] %s2514_s8 }
 0x177   : > { %v1569_v8 = vsel %vm1561_vm13, %v1536_v23, %v1289_v4  ;;  %v1161_v32 = vpop.permute.xlu1 %1160  ;;  %p3016_p3 = pnand %p3015_p2, %p3011_p13 }
 0x178   : > { %2707 = vmatmul.msk.bf16.gmra.mxu0 %vm1594_vm14, %v1569_v8  ;;  %v1449_v3 = vsel %vm1429_vm9, %v1416_v2, %v1161_v32 }
 0x17a   : > { %v1169_v36 = vpop.permute.xlu2 %1168 }
 0x17b   : > { %v1457_v15 = vsel %vm1429_vm9, %v1424_v25, %v1169_v36  ;;  %v1737_v25 = vpop.f32.mrf.mxu2 }
 0x17c   : > { %1277 = vrot.lane.b32.xlu0 %v1246_v38, %s3062_s16 }
 0x17e   : > { %v1083_v12 = vpop.permute.xlu0 %1082 }
 0x17f   : > { %v1196_v44 = vpop.permute.xlu1 %1195  ;;  %v1375_v16 = vsel %vm1363_vm7, %v1332_v52, %v1083_v12  ;;  %v1705_v12 = vpop.f32.mrf.mxu0 }
 0x180   : > { %v1482_v7 = vsel %vm1462_vm10, %v1449_v3, %v1196_v44 }
 0x182   : > { %v1204_v24 = vpop.permute.xlu2 %1203 }
 0x183   : > { %v1490_v31 = vsel %vm1462_vm10, %v1457_v15, %v1204_v24 }
 0x186   : > { %v1118_v43 = vpop.permute.xlu0 %1117 }
 0x187   : > { %v1231_v57 = vpop.permute.xlu1 %1230  ;;  %v1408_v17 = vsel %vm1396_vm8, %v1375_v16, %v1118_v43  ;;  %v1707_v24 = vpop.f32.mrf.mxu0 }
 0x188   : > { %v1515_v39 = vsel %vm1495_vm11, %v1482_v7, %v1231_v57 }
 0x18a   : > { %v1293_v26 = vpop.permute.xlu2 %1292 }
 0x18e   : > { %v1153_v59 = vpop.permute.xlu0 %1152 }
 0x18f   : > { %v1266_v50 = vpop.permute.xlu1 %1265  ;;  %v1441_v58 = vsel %vm1429_vm9, %v1408_v17, %v1153_v59 }
 0x190   : > { %v1548_v9 = vsel %vm1528_vm12, %v1515_v39, %v1266_v50  ;;  %v4066_v39 = vld [vmem:[%s5080_s2] ss:$0 sm:$0xff] }
 0x192   : > { %v1013_v20 = vpop.permute.xlu2 %1012 }
 0x193   : > { %v1347_v63 = vsel %vm1314_vm6, %v3658_v6, %v1013_v20 }
 0x196   : > { %v1188_v13 = vpop.permute.xlu0 %1187 }
 0x197   : > { %v1301_v51 = vpop.permute.xlu1 %1300  ;;  %v1474_v33 = vsel %vm1462_vm10, %v1441_v58, %v1188_v13  ;;  %v4069_v13 = vadd.f32 %v4066_v39, %v1707_v24 }
 0x198   : > { %v1581_v48 = vsel %vm1561_vm13, %v1548_v9, %v1301_v51  ;;  %v4072_v51 = vadd.f32 %v4066_v39, %v1705_v12 }
 0x199   : > { %2713 = vmatmul.msk.bf16.gmra.mxu2 %vm1594_vm14, %v1581_v48  ;;  %v1710_v48 = vpop.f32.mrf.mxu0 }
 0x19a   : > { %v1163_v53 = vpop.permute.xlu2 %1162  ;;  %v2720_v55 = vmul.f32 -1.442695, %v4072_v51 }
 0x19e   : > { %v1223_v45 = vpop.permute.xlu0 %1222 }
 0x19f   : > { %v1239_v47 = vpop.permute.xlu1 %1238  ;;  %v1507_v18 = vsel %vm1495_vm11, %v1474_v33, %v1223_v45 }
 0x1a0   : > { %v1523_v37 = vsel %vm1495_vm11, %v1490_v31, %v1239_v47 }
 0x1a1   : > { %v1712_v20 = vpop.f32.mrf.mxu0 }
 0x1a2   : > { %v1101_v5 = vpop.permute.xlu2 %1100 }
 0x1a6   : > { %v1258_v61 = vpop.permute.xlu0 %1257 }
 0x1a7   : > { %v1540_v54 = vsel %vm1528_vm12, %v1507_v18, %v1258_v61  ;;  %v1309_v10 = vpop.permute.xlu1 %1308 }
 0x1a8   : > { %v1573_v1 = vsel %vm1561_vm13, %v1540_v54, %v1293_v26  ;;  %v2721_v26 = vmul.f32 -1.442695, %v4069_v13  ;;  %v4083_v54 = vadd.f32 %v4066_v39, %v1710_v48 }
 0x1a9   : > { %2709 = vmatmul.msk.bf16.gmra.mxu1 %vm1594_vm14, %v1573_v1 }
 0x1aa   : > { %v1268_v49 = vpop.permute.xlu2 %1267  ;;  %2855 = vpow2.f32 %v2721_v26 }
 0x1ab   : > { %2857 = vpow2.f32 %v2720_v55 }
 0x1ae   : > { %v1274_v27 = vpop.permute.xlu0 %1273 }
 0x1af   : > { %v1556_v40 = vsel %vm1528_vm12, %v1523_v37, %v1274_v27  ;;  %v1128_v28 = vpop.permute.xlu1 %1127  ;;  %v4089_v37 = vadd.f32 %v4066_v39, %v1735_v21 }
 0x1b0   : > { %v1589_v56 = vsel %vm1561_vm13, %v1556_v40, %v1309_v10  ;;  %v2856_v33 = vpop.eup %2855  ;;  %v4095_v40 = vadd.f32 %v4066_v39, %v1737_v25 }
 0x1b1   : > { %2717 = vmatmul.msk.bf16.gmra.mxu3 %vm1594_vm14, %v1589_v56  ;;  %v4085_v1 = vadd.f32 1.0, %v2856_v33  ;;  %v2722_v56 = vmul.f32 -1.442695, %v4083_v54 }
 0x1b2   : > { %v1206_v6 = vpop.permute.xlu2 %1205 }
 0x1b3   : > { %2859 = vrcp.f32 %v4085_v1  ;;  %vm1933_vm1 = vweird.f32 %v4085_v1  ;;  %v1937_v26 = vand.u32 2147483647, %v4085_v1 }
 0x1b5   : > { %vm1938_vm5 = vcmp.eq.f32.partialorder %v1937_v26, 8.507059e+37 }
 0x1b6   : > { %v1093_v22 = vpop.permute.xlu0 %1092 }
 0x1b7   : > { %v1198_v14 = vpop.permute.xlu1 %1197  ;;  %v1385_v46 = vsel %vm1363_vm7, %v1347_v63, %v1093_v22  ;;  %v1715_v22 = vpop.f32.mrf.mxu0  ;;  %v2733_v63 = vmul.f32 -1.442695, %v4095_v40 }
 0x1b8   : > { %v1418_v35 = vsel %vm1396_vm8, %v1385_v46, %v1128_v28 }
 0x1b9   : > { %v1451_v41 = vsel %vm1429_vm9, %v1418_v35, %v1163_v53 }
 0x1ba   : > { %v1484_v23 = vsel %vm1462_vm10, %v1451_v41, %v1198_v14  ;;  %v1311_v19 = vpop.permute.xlu2 %1310  ;;  %v4102_v14 = vadd.f32 %v4066_v39, %v1712_v20 }
 0x1bc   : > { %v2723_v46 = vmul.f32 -1.442695, %v4102_v14 }
 0x1be   : > { %v1021_v42 = vpop.permute.xlu0 %1020 }
 0x1bf   : > { %v1136_v0 = vpop.permute.xlu1 %1135  ;;  %v1359_v44 = vsel %vm1314_vm6, %v3728_v11, %v1021_v42  ;;  %v1717_v41 = vpop.f32.mrf.mxu0 }
 0x1c0   : > { %v1393_v36 = vsel %vm1363_vm7, %v1359_v44, %v1101_v5  ;;  %v2732_v5 = vmul.f32 -1.442695, %v4089_v37 }
 0x1c1   : > { %v1426_v60 = vsel %vm1396_vm8, %v1393_v36, %v1136_v0 }
 0x1c2   : > { %v1138_v47 = vpop.permute.xlu2 %1137 }
 0x1c6   : > { %v1233_v4 = vpop.permute.xlu0 %1232 }
 0x1c7   : > { %v1517_v8 = vsel %vm1495_vm11, %v1484_v23, %v1233_v4  ;;  %v1303_v32 = vpop.permute.xlu1 %1302  ;;  %v1740_v23 = vpop.f32.mrf.mxu2 }
 0x1c8   : > { %v1550_v38 = vsel %vm1528_vm12, %v1517_v8, %v1268_v49 }
 0x1c9   : > { %v1583_v30 = vsel %vm1561_vm13, %v1550_v38, %v1303_v32 }
 0x1ca   : > { %2714 = vmatmul.msk.bf16.gmra.mxu2 %vm1594_vm14, %v1583_v30  ;;  %v1243_v61 = vpop.permute.xlu2 %1242  ;;  %v4119_v30 = vadd.f32 %v4066_v39, %v1715_v22 }
 0x1ce   : > { %v1171_v43 = vpop.permute.xlu0 %1170 }
 0x1cf   : > { %v1276_v57 = vpop.permute.xlu1 %1275  ;;  %v1459_v29 = vsel %vm1429_vm9, %v1426_v60, %v1171_v43  ;;  %v4124_v43 = vadd.f32 %v4066_v39, %v1717_v41  ;;  %v2724_v60 = vmul.f32 -1.442695, %v4119_v30 }
 0x1d0   : > { %v1492_v59 = vsel %vm1462_vm10, %v1459_v29, %v1206_v6 }
 0x1d6   : > { %v1241_v50 = vpop.permute.xlu0 %1240 }
 0x1d7   : > { %v1525_v2 = vsel %vm1495_vm11, %v1492_v59, %v1241_v50  ;;  %v1103_v11 = vpop.permute.xlu1 %1102 }
 0x1d8   : > { %v1558_v3 = vsel %vm1528_vm12, %v1525_v2, %v1276_v57  ;;  %v4138_v2 = vadd.f32 %v4066_v39, %v1740_v23 }
 0x1d9   : > { %v1591_v7 = vsel %vm1561_vm13, %v1558_v3, %v1311_v19  ;;  %v2725_v19 = vmul.f32 -1.442695, %v4124_v43  ;;  %v1742_v3 = vpop.f32.mrf.mxu2 }
 0x1da   : > { %2718 = vmatmul.msk.bf16.gmra.mxu3 %vm1594_vm14, %v1591_v7 }
 0x1de   : > { %v1023_v9 = vpop.permute.xlu0 %1022 }
 0x1df   : > { %v1362_v45 = vsel %vm1314_vm6, %v3871_v34, %v1023_v9  ;;  %v1208_v52 = vpop.permute.xlu1 %1207  ;;  %v2858_v34 = vpop.eup %2857  ;;  %v1939_v9 = vand.u32 2147483648, %v4085_v1 }
 0x1e0   : > { %v1395_v16 = vsel %vm1363_vm7, %v1362_v45, %v1103_v11  ;;  %v4092_v53 = vadd.f32 1.0, %v2858_v34  ;;  %v4108_v42 = vpop.eup %2859  ;;  %v2734_v45 = vmul.f32 -1.442695, %v4138_v2 }
 0x1e1   : > { %v1428_v62 = vsel %vm1396_vm8, %v1395_v16, %v1138_v47  ;;  %v1929_v49 = vmul.f32 %v4108_v42, %v4085_v1  ;;  %vm1934_vm15 = vweird.f32 %v4108_v42  ;;  %v4152_v47 = vadd.f32 %v4066_v39, %v1742_v3 }
 0x1e2   : > { %2861 = vrcp.f32 %v4092_v53  ;;  %v1924_v21 = vand.u32 2147483648, %v4092_v53  ;;  %vm4157_vm2 = vmor %vm1933_vm1, %vm1934_vm15  ;;  %vm1918_vm3 = vweird.f32 %v4092_v53 }
 0x1e3   : > { %2863 = vpow2.f32 %v2722_v56  ;;  %v1930_v6 = vsub.f32 1.0, %v1929_v49 }
 0x1e4   : > { %2865 = vpow2.f32 %v2732_v5 }
 0x1e5   : > { %2867 = vpow2.f32 %v2733_v63  ;;  %v1931_v29 = vmul.f32 %v4108_v42, %v1930_v6 }
 0x1e6   : > { %v1173_v17 = vpop.permute.xlu0 %1172  ;;  %2869 = vpow2.f32 %v2723_v46 }
 0x1e7   : > { %v1461_v58 = vsel %vm1429_vm9, %v1428_v62, %v1173_v17  ;;  %v1313_v10 = vpop.permute.xlu1 %1312  ;;  %v1932_v7 = vadd.f32 %v4108_v42, %v1931_v29  ;;  %v1922_v17 = vand.u32 2147483647, %v4092_v53 }
 0x1e8   : > { %v1494_v18 = vsel %vm1462_vm10, %v1461_v58, %v1208_v52  ;;  %v4110_v0 = vpop.eup %2861 }
 0x1e9   : > { %v1527_v15 = vsel %vm1495_vm11, %v1494_v18, %v1243_v61  ;;  %v2864_v35 = vpop.eup %2863  ;;  %v1914_v8 = vmul.f32 %v4110_v0, %v4092_v53  ;;  %vm1919_vm0 = vweird.f32 %v4110_v0  ;;  %v1936_v62 = vsel %vm4157_vm2, %v4108_v42, %v1932_v7  ;;  %v1725_v61 = vpop.f32.mrf.mxu1 }
 0x1ea   : > { %v2866_v4 = vpop.eup %2865  ;;  %v4116_v38 = vadd.f32 1.0, %v2864_v35  ;;  %vm4172_vm4 = vmor %vm1918_vm3, %vm1919_vm0  ;;  %v1940_v18 = vor.u32 1.1754944e-38, %v1939_v9  ;;  %vm1923_vm6 = vcmp.eq.f32.partialorder %v1922_v17, 8.507059e+37  ;;  %v4220_v26 = vadd.f32 %v4066_v39, %v1725_v61  ;;  %v1745_v61 = vpop.f32.mrf.mxu2 }
 0x1eb   : > { %v2868_v32 = vpop.eup %2867  ;;  %v4121_v44 = vadd.f32 1.0, %v2866_v4  ;;  %v1915_v57 = vsub.f32 1.0, %v1914_v8 }
 0x1ec   : > { %v2870_v12 = vpop.eup %2869  ;;  %v4126_v36 = vadd.f32 1.0, %v2868_v32  ;;  %2871 = vrcp.f32 %v4116_v38  ;;  %vm1948_vm11 = vweird.f32 %v4116_v38 }
 0x1ed   : > { %v4131_v59 = vadd.f32 1.0, %v2870_v12  ;;  %2873 = vrcp.f32 %v4121_v44  ;;  %v1916_v24 = vmul.f32 %v4110_v0, %v1915_v57  ;;  %v2104_v63 = vand.u32 2147483648, %v4121_v44 }
 0x1ee   : > { %v1278_v31 = vpop.permute.xlu0 %1277  ;;  %2875 = vrcp.f32 %v4126_v36  ;;  %v2102_v6 = vand.u32 2147483647, %v4121_v44  ;;  %vm2098_vm7 = vweird.f32 %v4121_v44  ;;  %vm2113_vm10 = vweird.f32 %v4126_v36 }
 0x1ef   : > { %v1560_v27 = vsel %vm1528_vm12, %v1527_v15, %v1278_v31  ;;  %2877 = vpow2.f32 %v2724_v60  ;;  %v1917_v48 = vadd.f32 %v4110_v0, %v1916_v24  ;;  %v1925_v31 = vor.u32 1.1754944e-38, %v1924_v21  ;;  %v1760_v24 = vpop.f32.mrf.mxu3 }
 0x1f0   : > { %v1593_v28 = vsel %vm1561_vm13, %v1560_v27, %v1313_v10  ;;  %2879 = vrcp.f32 %v4131_v59  ;;  %v2735_v10 = vmul.f32 -1.442695, %v4152_v47  ;;  %v1941_v27 = vsel %vm1938_vm5, %v1940_v18, %v1936_v62 }
 0x1f1   : > { %2719 = vmatmul.msk.bf16.gmra.mxu3 %vm1594_vm14, %v1593_v28  ;;  %2881 = vpow2.f32 %v2725_v19  ;;  %v1921_v25 = vsel %vm4172_vm4, %v4110_v0, %v1917_v48  ;;  %v2394_v0 = vmul.f32 %v1941_v27, %v4069_v13  ;;  %v4209_v60 = vor.u32 1.1754944e-38, %v2104_v63  ;;  %v1727_v3 = vpop.f32.mrf.mxu1 }
 0x1f2   : > { %v4143_v11 = vpop.eup %2871  ;;  %2883 = vpow2.f32 %v2734_v45  ;;  %v1926_v5 = vsel %vm1923_vm6, %v1925_v31, %v1921_v25  ;;  %v1954_v48 = vand.u32 2147483648, %v4116_v38  ;;  %v2119_v17 = vand.u32 2147483648, %v4126_v36 }
 0x1f3   : > { %v4154_v55 = vpop.eup %2873  ;;  %v1944_v58 = vmul.f32 %v4143_v11, %v4116_v38  ;;  %2885 = vpow2.f32 %v2735_v10  ;;  %v2393_v8 = vmul.f32 %v1926_v5, %v4072_v51  ;;  %vm1949_vm8 = vweird.f32 %v4143_v11 }
 0x1f4   : > { %v4161_v16 = vpop.eup %2875  ;;  %v2094_v53 = vmul.f32 %v4154_v55, %v4121_v44  ;;  %vm2099_vm9 = vweird.f32 %v4154_v55  ;;  %v4231_v62 = vadd.f32 %v4066_v39, %v1727_v3  ;;  %vm4234_vm12 = vmor %vm1948_vm11, %vm1949_vm8  ;;  %v1955_v10 = vor.u32 1.1754944e-38, %v1954_v48 }
 0x1f5   : > { %v1720_v50 = vpop.f32.mrf.mxu0  ;;  %v2878_v20 = vpop.eup %2877  ;;  %v1945_v56 = vsub.f32 1.0, %v1944_v58  ;;  %v2109_v35 = vmul.f32 %v4161_v16, %v4126_v36  ;;  %v4206_v57 = vadd.f32 %v2394_v0, %v2393_v8  ;;  %vm2114_vm14 = vweird.f32 %v4161_v16  ;;  %vm4265_vm1 = vmor %vm2098_vm7, %vm2099_vm9 }
 0x1f6   : > { %v4176_v34 = vpop.eup %2879  ;;  %v4185_v28 = vadd.f32 %v4066_v39, %v1720_v50  ;;  %v4187_v22 = vadd.f32 1.0, %v2878_v20  ;;  %v2095_v41 = vsub.f32 1.0, %v2094_v53  ;;  %v1952_v50 = vand.u32 2147483647, %v4116_v38  ;;  %vm4298_vm4 = vmor %vm2113_vm10, %vm2114_vm14 }
 0x1f7   : > { %v2882_v15 = vpop.eup %2881  ;;  %v1959_v46 = vmul.f32 %v4176_v34, %v4131_v59  ;;  %v1946_v32 = vmul.f32 %v4143_v11, %v1945_v56  ;;  %v2110_v29 = vsub.f32 1.0, %v2109_v35  ;;  %vm1964_vm15 = vweird.f32 %v4176_v34 }
 0x1f8   : > { %v4198_v49 = vadd.f32 1.0, %v2882_v15  ;;  %v2726_v23 = vmul.f32 -1.442695, %v4185_v28  ;;  %v2884_v4 = vpop.eup %2883  ;;  %2887 = vrcp.f32 %v4187_v22  ;;  %v2096_v51 = vmul.f32 %v4154_v55, %v2095_v41 }
 0x1f9   : > { %v1960_v12 = vsub.f32 1.0, %v1959_v46  ;;  %v4214_v19 = vadd.f32 1.0, %v2884_v4  ;;  %v2886_v7 = vpop.eup %2885  ;;  %v1947_v9 = vadd.f32 %v4143_v11, %v1946_v32  ;;  %v2111_v52 = vmul.f32 %v4161_v16, %v2110_v29  ;;  %v1762_v29 = vpop.f32.mrf.mxu3 }
 0x1fa   : > { %2889 = vrcp.f32 %v4198_v49  ;;  %v2097_v58 = vadd.f32 %v4154_v55, %v2096_v51  ;;  %vm4238_vm13 = vcmp.eq.f32.partialorder %v1952_v50, 8.507059e+37  ;;  %v4243_v18 = vadd.f32 1.0, %v2886_v7 }
 0x1fb   : > { %2891 = vpow2.f32 %v2726_v23  ;;  %v1961_v45 = vmul.f32 %v4176_v34, %v1960_v12  ;;  %v1951_v38 = vsel %vm4234_vm12, %v4143_v11, %v1947_v9  ;;  %v1967_v27 = vand.u32 2147483647, %v4131_v59 }
 0x1fc   : > { %v2112_v56 = vadd.f32 %v4161_v16, %v2111_v52  ;;  %vm1963_vm0 = vweird.f32 %v4131_v59  ;;  %v1969_v5 = vand.u32 2147483648, %v4131_v59  ;;  %v2729_v11 = vmul.f32 -1.442695, %v4231_v62 }
 0x1fd   : > { %v1722_v1 = vpop.f32.mrf.mxu0  ;;  %v1962_v31 = vadd.f32 %v4176_v34, %v1961_v45  ;;  %v1956_v0 = vsel %vm4238_vm13, %v1955_v10, %v1951_v38  ;;  %v4273_v35 = vadd.f32 %v4066_v39, %v1760_v24  ;;  %v2117_v41 = vand.u32 2147483647, %v4126_v36  ;;  %vm4280_vm2 = vmor %vm1963_vm0, %vm1964_vm15 }
 0x1fe   : > { %v4193_v42 = vadd.f32 %v4066_v39, %v1722_v1  ;;  %v4225_v21 = vpop.eup %2887  ;;  %v2728_v1 = vmul.f32 -1.442695, %v4220_v26  ;;  %v2120_v23 = vor.u32 1.1754944e-38, %v2119_v17  ;;  %v2101_v12 = vsel %vm4265_vm1, %v4154_v55, %v2097_v58  ;;  %v1747_v17 = vpop.f32.mrf.mxu2 }
 0x1ff   : > { %v1974_v53 = vmul.f32 %v4225_v21, %v4187_v22  ;;  %vm1968_vm3 = vcmp.eq.f32.partialorder %v1967_v27, 8.507059e+37  ;;  %v2395_v24 = vmul.f32 %v1956_v0, %v4083_v54  ;;  %v1970_v3 = vor.u32 1.1754944e-38, %v1969_v5 }
 0x200   : > { %v2727_v13 = vmul.f32 -1.442695, %v4193_v42  ;;  %v4245_v25 = vpop.eup %2889  ;;  %v2742_v7 = vmul.f32 -1.442695, %v4273_v35  ;;  %v4310_v48 = vadd.f32 %v4066_v39, %v1745_v61  ;;  %v4315_v54 = vadd.f32 %v4066_v39, %v1762_v29 }
 0x201   : > { %v2892_v15 = vpop.eup %2891  ;;  %v1989_v59 = vmul.f32 %v4245_v25, %v4198_v49  ;;  %v1975_v51 = vsub.f32 1.0, %v1974_v53  ;;  %vm2103_vm5 = vcmp.eq.f32.partialorder %v2102_v6, 8.507059e+37  ;;  %vm2118_vm6 = vcmp.eq.f32.partialorder %v2117_v41, 8.507059e+37 }
 0x202   : > { %2893 = vpow2.f32 %v2727_v13  ;;  %v4284_v8 = vadd.f32 1.0, %v2892_v15  ;;  %v1966_v13 = vsel %vm4280_vm2, %v4176_v34, %v1962_v31  ;;  %v2116_v34 = vsel %vm4298_vm4, %v4161_v16, %v2112_v56 }
 0x203   : > { %2895 = vrcp.f32 %v4214_v19  ;;  %v1990_v9 = vsub.f32 1.0, %v1989_v59  ;;  %v1971_v36 = vsel %vm1968_vm3, %v1970_v3, %v1966_v13  ;;  %v1976_v16 = vmul.f32 %v4225_v21, %v1975_v51 }
 0x204   : > { %2897 = vrcp.f32 %v4243_v18  ;;  %v4324_v20 = vsel %vm2103_vm5, %v4209_v60, %v2101_v12  ;;  %v4326_v33 = vsel %vm2118_vm6, %v2120_v23, %v2116_v34  ;;  %v2426_v61 = vadd.f32 %v4206_v57, %v2395_v24 }
 0x205   : > { %2899 = vpow2.f32 %v2728_v1  ;;  %v2396_v38 = vmul.f32 %v1971_v36, %v4102_v14  ;;  %v1991_v44 = vmul.f32 %v4245_v25, %v1990_v9  ;;  %v2736_v6 = vmul.f32 -1.442695, %v4310_v48 }
 0x206   : > { %2901 = vpow2.f32 %v2729_v11  ;;  %v2743_v31 = vmul.f32 -1.442695, %v4315_v54  ;;  %v4335_v60 = vadd.f32 %v4066_v39, %v1747_v17  ;;  %v1977_v14 = vadd.f32 %v4225_v21, %v1976_v16 }
 0x207   : > { %2903 = vrcp.f32 %v4284_v8  ;;  %vm1979_vm7 = vweird.f32 %v4225_v21  ;;  %vm1978_vm8 = vweird.f32 %v4187_v22  ;;  %v1982_v5 = vand.u32 2147483647, %v4187_v22 }
 0x208   : > { %v2894_v63 = vpop.eup %2893  ;;  %v1984_v11 = vand.u32 2147483648, %v4187_v22  ;;  %v1992_v46 = vadd.f32 %v4245_v25, %v1991_v44  ;;  %vm1994_vm9 = vweird.f32 %v4245_v25  ;;  %vm4358_vm10 = vmor %vm1978_vm8, %vm1979_vm7  ;;  %vm1993_vm11 = vweird.f32 %v4198_v49 }
 0x209   : > { %v4286_v32 = vpop.eup %2895  ;;  %v4303_v55 = vadd.f32 1.0, %v2894_v63  ;;  %v1999_v23 = vand.u32 2147483648, %v4198_v49  ;;  %v2737_v22 = vmul.f32 -1.442695, %v4335_v60  ;;  %v1981_v12 = vsel %vm4358_vm10, %v4225_v21, %v1977_v14  ;;  %vm4375_vm12 = vmor %vm1993_vm11, %vm1994_vm9 }
 0x20a   : > { %v2124_v45 = vmul.f32 %v4286_v32, %v4214_v19  ;;  %v4318_v52 = vpop.eup %2897  ;;  %v1997_v13 = vand.u32 2147483647, %v4198_v49  ;;  %v1985_v24 = vor.u32 1.1754944e-38, %v1984_v11  ;;  %vm1983_vm13 = vcmp.eq.f32.partialorder %v1982_v5, 8.507059e+37 }
 0x20b   : > { %v2900_v58 = vpop.eup %2899  ;;  %2905 = vrcp.f32 %v4303_v55  ;;  %v2139_v57 = vmul.f32 %v4318_v52, %v4243_v18  ;;  %v1996_v49 = vsel %vm4375_vm12, %v4245_v25, %v1992_v46  ;;  %v2000_v9 = vor.u32 1.1754944e-38, %v1999_v23 }
 0x20c   : > { %2907 = vpow2.f32 %v2742_v7  ;;  %v2902_v1 = vpop.eup %2901  ;;  %v2125_v15 = vsub.f32 1.0, %v2124_v45  ;;  %v4344_v53 = vadd.f32 1.0, %v2900_v58  ;;  %v1986_v7 = vsel %vm1983_vm13, %v1985_v24, %v1981_v12 }
 0x20d   : > { %v4346_v56 = vpop.eup %2903  ;;  %2909 = vpow2.f32 %v2736_v6  ;;  %v4354_v0 = vadd.f32 1.0, %v2902_v1  ;;  %v2140_v50 = vsub.f32 1.0, %v2139_v57  ;;  %v2427_v16 = vadd.f32 %v2426_v61, %v2396_v38 }
 0x20e   : > { %v2004_v29 = vmul.f32 %v4346_v56, %v4284_v8  ;;  %v2126_v51 = vmul.f32 %v4286_v32, %v2125_v15  ;;  %v2134_v17 = vand.u32 2147483648, %v4214_v19  ;;  %vm1998_vm14 = vcmp.eq.f32.partialorder %v1997_v13, 8.507059e+37 }
 0x20f   : > { %vm2129_vm15 = vweird.f32 %v4286_v32  ;;  %v2001_v6 = vsel %vm1998_vm14, %v2000_v9, %v1996_v49  ;;  %v2397_v61 = vmul.f32 %v1986_v7, %v4119_v30  ;;  %vm2128_vm0 = vweird.f32 %v4214_v19 }
 0x210   : > { %v2005_v58 = vsub.f32 1.0, %v2004_v29  ;;  %v4390_v25 = vadd.f32 %v4286_v32, %v2126_v51  ;;  %v2141_v5 = vmul.f32 %v4318_v52, %v2140_v50  ;;  %v2132_v46 = vand.u32 2147483647, %v4214_v19  ;;  %vm4413_vm1 = vmor %vm2128_vm0, %vm2129_vm15  ;;  %v1765_v50 = vpop.f32.mrf.mxu3 }
 0x211   : > { %v4356_v59 = vpop.eup %2905  ;;  %v2398_v41 = vmul.f32 %v2001_v6, %v4124_v43  ;;  %v2428_v51 = vadd.f32 %v2427_v16, %v2397_v61  ;;  %vm2009_vm2 = vweird.f32 %v4346_v56  ;;  %vm2008_vm3 = vweird.f32 %v4284_v8 }
 0x212   : > { %v2908_v4 = vpop.eup %2907  ;;  %v2019_v21 = vmul.f32 %v4356_v59, %v4303_v55  ;;  %v2006_v23 = vmul.f32 %v4346_v56, %v2005_v58  ;;  %v2131_v29 = vsel %vm4413_vm1, %v4286_v32, %v4390_v25  ;;  %v4430_v3 = vadd.f32 %v4318_v52, %v2141_v5  ;;  %vm4458_vm5 = vmor %vm2008_vm3, %vm2009_vm2 }
 0x213   : > { %v2910_v45 = vpop.eup %2909  ;;  %v2014_v58 = vand.u32 2147483648, %v4284_v8  ;;  %vm2024_vm4 = vweird.f32 %v4356_v59  ;;  %vm2023_vm6 = vweird.f32 %v4303_v55  ;;  %vm2038_vm9 = vweird.f32 %v4344_v53 }
 0x214   : > { %v2020_v38 = vsub.f32 1.0, %v2019_v21  ;;  %v4403_v11 = vadd.f32 1.0, %v2910_v45  ;;  %v2007_v9 = vadd.f32 %v4346_v56, %v2006_v23  ;;  %vm4479_vm7 = vmor %vm2023_vm6, %vm2024_vm4  ;;  %vm2053_vm13 = vweird.f32 %v4354_v0 }
 0x215   : > { %vm2144_vm14 = vweird.f32 %v4318_v52  ;;  %vm2143_vm3 = vweird.f32 %v4243_v18  ;;  %vm4536_vm4 = vcmp.eq.f32.partialorder %v2132_v46, 8.507059e+37  ;;  %v2405_v32 = vmul.f32 %v4324_v20, %v4089_v37 }
 0x216   : > { %v2021_v24 = vmul.f32 %v4356_v59, %v2020_v38  ;;  %v5129_v25 = vand.u32 2147483647, %v4243_v18 }
 0x218   : > { %v2022_v6 = vadd.f32 %v4356_v59, %v2021_v24  ;;  %v2042_v24 = vand.u32 2147483647, %v4344_v53  ;;  %v1767_v13 = vpop.f32.mrf.mxu3  ;;  %vm2148_vm1 = vcmp.eq.f32.partialorder %v5129_v25, 8.507059e+37 }
 0x21a   : > { %vm4500_vm12 = vcmp.eq.f32.partialorder %v2042_v24, 8.507059e+37  ;;  %v2057_v24 = vand.u32 2147483647, %v4354_v0 }
 0x226   : > { %v1730_v10 = vpop.f32.mrf.mxu1 }
 0x227   : > { %v4338_v27 = vadd.f32 %v4066_v39, %v1730_v10  ;;  %v1750_v10 = vpop.f32.mrf.mxu2 }
 0x229   : > { %v2730_v63 = vmul.f32 -1.442695, %v4338_v27 }
 0x22b   : > { %2911 = vpow2.f32 %v2730_v63 }
 0x22c   : > { %2913 = vrcp.f32 %v4344_v53 }
 0x22d   : > { %2915 = vpow2.f32 %v2743_v31  ;;  %v4396_v31 = vadd.f32 1.0, %v2908_v4  ;;  %v4417_v4 = vor.u32 1.1754944e-38, %v2134_v17  ;;  %v2012_v17 = vand.u32 2147483647, %v4284_v8 }
 0x22e   : > { %2917 = vrcp.f32 %v4354_v0  ;;  %v1732_v34 = vpop.f32.mrf.mxu1  ;;  %v2029_v8 = vand.u32 2147483648, %v4303_v55 }
 0x22f   : > { %2919 = vpow2.f32 %v2737_v22  ;;  %v4386_v36 = vadd.f32 %v4066_v39, %v1732_v34  ;;  %v4437_v34 = vadd.f32 %v2428_v51, %v2398_v41  ;;  %v1752_v23 = vpop.f32.mrf.mxu2  ;;  %vm2013_vm8 = vcmp.eq.f32.partialorder %v2012_v17, 8.507059e+37 }
 0x230   : > { %v4488_v5 = vadd.f32 %v4066_v39, %v1752_v23  ;;  %v2030_v12 = vor.u32 1.1754944e-38, %v2029_v8  ;;  %v2252_v37 = vand.u32 2147483647, %v4396_v31 }
 0x231   : > { %v2912_v44 = vpop.eup %2911  ;;  %v2731_v1 = vmul.f32 -1.442695, %v4386_v36 }
 0x232   : > { %v4394_v15 = vpop.eup %2913  ;;  %v4399_v57 = vadd.f32 1.0, %v2912_v44 }
 0x233   : > { %v2916_v14 = vpop.eup %2915  ;;  %2921 = vpow2.f32 %v2731_v1  ;;  %v2034_v43 = vmul.f32 %v4394_v15, %v4344_v53  ;;  %v4451_v1 = vadd.f32 %v4066_v39, %v1750_v10  ;;  %v2011_v10 = vsel %vm4458_vm5, %v4346_v56, %v2007_v9 }
 0x234   : > { %v4405_v63 = vpop.eup %2917  ;;  %2923 = vrcp.f32 %v4399_v57  ;;  %v4432_v49 = vadd.f32 1.0, %v2916_v14  ;;  %v4456_v14 = vadd.f32 %v4066_v39, %v1765_v50  ;;  %vm2039_vm11 = vweird.f32 %v4394_v15 }
 0x235   : > { %v2920_v30 = vpop.eup %2919  ;;  %2925 = vrcp.f32 %v4396_v31  ;;  %v2049_v21 = vmul.f32 %v4405_v63, %v4354_v0  ;;  %v2035_v16 = vsub.f32 1.0, %v2034_v43  ;;  %v2027_v43 = vand.u32 2147483647, %v4303_v55  ;;  %vm4515_vm15 = vmor %vm2038_vm9, %vm2039_vm11 }
 0x236   : > { %2927 = vrcp.f32 %v4403_v11  ;;  %v4439_v7 = vadd.f32 1.0, %v2920_v30  ;;  %v2026_v55 = vsel %vm4479_vm7, %v4356_v59, %v2022_v6  ;;  %v2738_v9 = vmul.f32 -1.442695, %v4451_v1 }
 0x237   : > { %v2050_v38 = vsub.f32 1.0, %v2049_v21  ;;  %v2036_v50 = vmul.f32 %v4394_v15, %v2035_v16  ;;  %v2015_v21 = vor.u32 1.1754944e-38, %v2014_v58  ;;  %v2044_v16 = vand.u32 2147483648, %v4344_v53 }
 0x238   : > { %v2744_v17 = vmul.f32 -1.442695, %v4456_v14  ;;  %vm2028_vm10 = vcmp.eq.f32.partialorder %v2027_v43, 8.507059e+37  ;;  %v4508_v43 = vadd.f32 %v4066_v39, %v1767_v13  ;;  %vm2054_vm0 = vweird.f32 %v4405_v63 }
 0x239   : > { %v2922_v45 = vpop.eup %2921  ;;  %v2016_v58 = vsel %vm2013_vm8, %v2015_v21, %v2011_v10  ;;  %v2037_v59 = vadd.f32 %v4394_v15, %v2036_v50  ;;  %v2031_v6 = vsel %vm2028_vm10, %v2030_v12, %v2026_v55  ;;  %v2045_v21 = vor.u32 1.1754944e-38, %v2044_v16  ;;  %vm4542_vm5 = vmor %vm2053_vm13, %vm2054_vm0 }
 0x23a   : > { %v4446_v44 = vpop.eup %2923  ;;  %v4453_v61 = vadd.f32 1.0, %v2922_v45  ;;  %v2399_v8 = vmul.f32 %v2016_v58, %v4185_v28  ;;  %v2400_v13 = vmul.f32 %v2031_v6, %v4193_v42  ;;  %v2059_v16 = vand.u32 2147483648, %v4354_v0 }
 0x23b   : > { %v2064_v41 = vmul.f32 %v4446_v44, %v4399_v57  ;;  %v4465_v30 = vpop.eup %2925  ;;  %v2041_v55 = vsel %vm4515_vm15, %v4394_v15, %v2037_v59  ;;  %vm2069_vm2 = vweird.f32 %v4446_v44  ;;  %vm2068_vm6 = vweird.f32 %v4399_v57  ;;  %vm4595_vm15 = vmor %vm2143_vm3, %vm2144_vm14 }
 0x23c   : > { %2929 = vrcp.f32 %v4453_v61  ;;  %v4473_v51 = vpop.eup %2927  ;;  %v2430_v58 = vadd.f32 %v4437_v34, %v2399_v8  ;;  %v2072_v59 = vand.u32 2147483647, %v4399_v57  ;;  %v2046_v19 = vsel %vm4500_vm12, %v2045_v21, %v2041_v55  ;;  %vm4557_vm8 = vmor %vm2068_vm6, %vm2069_vm2 }
 0x23d   : > { %v2065_v56 = vsub.f32 1.0, %v2064_v41  ;;  %2931 = vrcp.f32 %v4439_v7  ;;  %v2051_v41 = vmul.f32 %v4405_v63, %v2050_v38  ;;  %v2739_v38 = vmul.f32 -1.442695, %v4488_v5 }
 0x23e   : > { %2933 = vpow2.f32 %v2738_v9  ;;  %v2431_v46 = vadd.f32 %v2430_v58, %v2400_v13  ;;  %vm2083_vm9 = vweird.f32 %v4453_v61  ;;  %vm2058_vm10 = vcmp.eq.f32.partialorder %v2057_v24, 8.507059e+37 }
 0x23f   : > { %v2066_v23 = vmul.f32 %v4446_v44, %v2065_v56  ;;  %v2052_v28 = vadd.f32 %v4405_v63, %v2051_v41  ;;  %v2074_v41 = vand.u32 2147483648, %v4399_v57  ;;  %2935 = vpow2.f32 %v2739_v38 }
 0x240   : > { %v2089_v57 = vand.u32 2147483648, %v4453_v61  ;;  %v2087_v38 = vand.u32 2147483647, %v4453_v61  ;;  %2937 = vpow2.f32 %v2744_v17  ;;  %v2401_v50 = vmul.f32 %v2046_v19, %v4220_v26 }
 0x241   : > { %v2067_v53 = vadd.f32 %v4446_v44, %v2066_v23  ;;  %v2056_v0 = vsel %vm4542_vm5, %v4405_v63, %v2052_v28  ;;  %v2060_v63 = vor.u32 1.1754944e-38, %v2059_v16  ;;  %v2075_v21 = vor.u32 1.1754944e-38, %v2074_v41 }
 0x242   : > { %v4498_v45 = vpop.eup %2929  ;;  %vm2073_vm12 = vcmp.eq.f32.partialorder %v2072_v59, 8.507059e+37  ;;  %v2244_v17 = vmul.f32 %v4465_v30, %v4396_v31  ;;  %v2745_v26 = vmul.f32 -1.442695, %v4508_v43  ;;  %v2432_v16 = vadd.f32 %v2431_v46, %v2401_v50 }
 0x243   : > { %v2079_v12 = vmul.f32 %v4498_v45, %v4453_v61  ;;  %v4523_v56 = vpop.eup %2931  ;;  %vm2084_vm7 = vweird.f32 %v4498_v45  ;;  %v2071_v8 = vsel %vm4557_vm8, %v4446_v44, %v2067_v53  ;;  %v1770_v61 = vpop.f32.mrf.mxu3  ;;  %v2061_v13 = vsel %vm2058_vm10, %v2060_v63, %v2056_v0 }
 0x244   : > { %v2934_v6 = vpop.eup %2933  ;;  %vm4570_vm11 = vmor %vm2083_vm9, %vm2084_vm7  ;;  %v2076_v55 = vsel %vm2073_vm12, %v2075_v21, %v2071_v8  ;;  %v2090_v53 = vor.u32 1.1754944e-38, %v2089_v57  ;;  %vm2088_vm13 = vcmp.eq.f32.partialorder %v2087_v38, 8.507059e+37  ;;  %2939 = vrcp.f32 %v4432_v49 }
 0x245   : > { %v2080_v9 = vsub.f32 1.0, %v2079_v12  ;;  %v4575_v28 = vadd.f32 1.0, %v2934_v6  ;;  %v2936_v24 = vpop.eup %2935  ;;  %v2403_v6 = vmul.f32 %v2076_v55, %v4338_v27  ;;  %v2136_v46 = vsel %vm4536_vm4, %v4417_v4, %v2131_v29 }
 0x246   : > { %v4602_v19 = vadd.f32 1.0, %v2936_v24  ;;  %v2938_v0 = vpop.eup %2937  ;;  %v5128_v23 = vand.u32 2147483648, %v4243_v18  ;;  %v2245_v4 = vsub.f32 1.0, %v2244_v17  ;;  %v2406_v38 = vmul.f32 %v4326_v33, %v4095_v40 }
 0x247   : > { %v2081_v34 = vmul.f32 %v4498_v45, %v2080_v9  ;;  %v2154_v9 = vmul.f32 %v4473_v51, %v4403_v11  ;;  %2941 = vrcp.f32 %v4575_v28  ;;  %v4633_v20 = vadd.f32 1.0, %v2938_v0 }
 0x248   : > { %v2150_v27 = vor.u32 1.1754944e-38, %v5128_v23  ;;  %2943 = vpow2.f32 %v2745_v26  ;;  %v2254_v63 = vand.u32 2147483648, %v4396_v31  ;;  %v4640_v50 = vadd.f32 %v4066_v39, %v1770_v61 }
 0x249   : > { %v2082_v10 = vadd.f32 %v4498_v45, %v2081_v34  ;;  %v2402_v34 = vmul.f32 %v2061_v13, %v4231_v62  ;;  %v2146_v62 = vsel %vm4595_vm15, %v4318_v52, %v4430_v3  ;;  %v2155_v8 = vsub.f32 1.0, %v2154_v9 }
 0x24a   : > { %v2151_v29 = vsel %vm2148_vm1, %v2150_v27, %v2146_v62  ;;  %v4625_v42 = vpop.eup %2939  ;;  %v2267_v33 = vand.u32 2147483647, %v4432_v49  ;;  %vm2158_vm14 = vweird.f32 %v4403_v11  ;;  %vm2159_vm0 = vweird.f32 %v4473_v51 }
 0x24b   : > { %v2086_v44 = vsel %vm4570_vm11, %v4498_v45, %v2082_v10  ;;  %v2169_v45 = vmul.f32 %v4523_v56, %v4439_v7  ;;  %v2433_v22 = vadd.f32 %v2432_v16, %v2402_v34  ;;  %v2156_v21 = vmul.f32 %v4473_v51, %v2155_v8  ;;  %vm4680_vm3 = vmor %vm2158_vm14, %vm2159_vm0 }
 0x24c   : > { %v2091_v41 = vsel %vm2088_vm13, %v2090_v53, %v2086_v44  ;;  %v1772_v44 = vpop.f32.mrf.mxu3  ;;  %v4643_v40 = vmul.f32 %v2151_v29, %v4152_v47  ;;  %v2259_v55 = vmul.f32 %v4625_v42, %v4432_v49  ;;  %v2162_v34 = vand.u32 2147483647, %v4403_v11 }
 0x24d   : > { %v1755_v58 = vpop.f32.mrf.mxu2  ;;  %v2404_v10 = vmul.f32 %v2091_v41, %v4386_v36  ;;  %v2170_v52 = vsub.f32 1.0, %v2169_v45  ;;  %v2434_v3 = vadd.f32 %v2433_v22, %v2403_v6  ;;  %v4630_v36 = vmul.f32 %v2136_v46, %v4138_v2  ;;  %v4635_v18 = vpop.eup %2941 }
 0x24e   : > { %v4589_v15 = vadd.f32 %v4066_v39, %v1755_v58  ;;  %v2246_v2 = vmul.f32 %v4465_v30, %v2245_v4  ;;  %v2944_v13 = vpop.eup %2943  ;;  %v2184_v47 = vmul.f32 %v4635_v18, %v4575_v28  ;;  %v4659_v9 = vadd.f32 %v4066_v39, %v1772_v44 }
 0x24f   : > { %v2435_v12 = vadd.f32 %v2434_v3, %v2404_v10  ;;  %v2171_v61 = vmul.f32 %v4523_v56, %v2170_v52  ;;  %v2157_v58 = vadd.f32 %v4473_v51, %v2156_v21  ;;  %v2746_v41 = vmul.f32 -1.442695, %v4640_v50 }
 0x250   : > { %v2740_v57 = vmul.f32 -1.442695, %v4589_v15  ;;  %v2164_v6 = vand.u32 2147483648, %v4403_v11  ;;  %v4670_v0 = vadd.f32 1.0, %v2944_v13  ;;  %vm2174_vm2 = vweird.f32 %v4523_v56 }
 0x251   : > { %v2436_v45 = vadd.f32 %v2435_v12, %v2405_v32  ;;  %v2172_v46 = vadd.f32 %v4523_v56, %v2171_v61  ;;  %v2179_v62 = vand.u32 2147483648, %v4439_v7  ;;  %vm2173_vm4 = vweird.f32 %v4439_v7 }
 0x252   : > { %2945 = vpow2.f32 %v2740_v57  ;;  %v2185_v27 = vsub.f32 1.0, %v2184_v47  ;;  %v2747_v8 = vmul.f32 -1.442695, %v4659_v9  ;;  %v2161_v22 = vsel %vm4680_vm3, %v4473_v51, %v2157_v58  ;;  %vm4696_vm5 = vmor %vm2173_vm4, %vm2174_vm2 }
 0x253   : > { %2947 = vrcp.f32 %v4602_v19  ;;  %v2177_v10 = vand.u32 2147483647, %v4439_v7  ;;  %v2437_v32 = vadd.f32 %v2436_v45, %v2406_v38  ;;  %v2260_v4 = vsub.f32 1.0, %v2259_v55 }
 0x254   : > { %2949 = vrcp.f32 %v4633_v20  ;;  %v2165_v29 = vor.u32 1.1754944e-38, %v2164_v6  ;;  %v4705_v7 = vadd.f32 %v4465_v30, %v2246_v2  ;;  %vm2163_vm6 = vcmp.eq.f32.partialorder %v2162_v34, 8.507059e+37 }
 0x255   : > { %v1757_v24 = vpop.f32.mrf.mxu2  ;;  %v2176_v51 = vsel %vm4696_vm5, %v4523_v56, %v2172_v46  ;;  %v2180_v38 = vor.u32 1.1754944e-38, %v2179_v62  ;;  %v2186_v44 = vmul.f32 %v4635_v18, %v2185_v27  ;;  %vm2178_vm7 = vcmp.eq.f32.partialorder %v2177_v10, 8.507059e+37  ;;  %v4745_v10 = vld [vmem:[%s5080_s2] ss:$0 sm:$0xff] }
 0x256   : > { %v4648_v17 = vadd.f32 %v4066_v39, %v1757_v24  ;;  %v2166_v12 = vsel %vm2163_vm6, %v2165_v29, %v2161_v22  ;;  %v2438_v2 = vadd.f32 %v2437_v32, %v4630_v36  ;;  %v4721_v56 = vmul.f32 %v4625_v42, %v2260_v4 }
 0x257   : > { %v2181_v61 = vsel %vm2178_vm7, %v2180_v38, %v2176_v51  ;;  %v2409_v58 = vmul.f32 %v2166_v12, %v4310_v48  ;;  %v2192_v45 = vand.u32 2147483647, %v4575_v28  ;;  %v2187_v34 = vadd.f32 %v4635_v18, %v2186_v44 }
 0x258   : > { %v2946_v53 = vpop.eup %2945  ;;  %v2741_v26 = vmul.f32 -1.442695, %v4648_v17  ;;  %vm2189_vm8 = vweird.f32 %v4635_v18  ;;  %v2410_v62 = vmul.f32 %v2181_v61, %v4335_v60  ;;  %vm2188_vm9 = vweird.f32 %v4575_v28 }
 0x259   : > { %v4662_v16 = vpop.eup %2947  ;;  %v4666_v59 = vadd.f32 1.0, %v2946_v53  ;;  %v2439_v48 = vadd.f32 %v2438_v2, %v4643_v40  ;;  %vm4756_vm10 = vmor %vm2188_vm9, %vm2189_vm8  ;;  %vm4760_vm11 = vcmp.eq.f32.partialorder %v2192_v45, 8.507059e+37  ;;  %v2209_v4 = vand.u32 2147483648, %v4602_v19 }
 0x25a   : > { %2951 = vpow2.f32 %v2741_v26  ;;  %v2199_v57 = vmul.f32 %v4662_v16, %v4602_v19  ;;  %v4692_v25 = vpop.eup %2949  ;;  %vm2249_vm12 = vweird.f32 %v4465_v30  ;;  %v2191_v29 = vsel %vm4756_vm10, %v4635_v18, %v2187_v34 }
 0x25b   : > { %2953 = vrcp.f32 %v4666_v59  ;;  %vm2204_vm13 = vweird.f32 %v4662_v16  ;;  %v2440_v44 = vadd.f32 %v2439_v48, %v2409_v58  ;;  %vm2248_vm1 = vweird.f32 %v4396_v31 }
 0x25c   : > { %2955 = vpow2.f32 %v2746_v41  ;;  %v2200_v24 = vsub.f32 1.0, %v2199_v57  ;;  %v2194_v41 = vand.u32 2147483648, %v4575_v28  ;;  %vm2203_vm14 = vweird.f32 %v4602_v19 }
 0x25d   : > { %v1775_v11 = vpop.f32.mrf.mxu3  ;;  %2957 = vrcp.f32 %v4670_v0  ;;  %v2224_v18 = vand.u32 2147483648, %v4666_v59  ;;  %vm4781_vm0 = vmor %vm2203_vm14, %vm2204_vm13  ;;  %v2207_v61 = vand.u32 2147483647, %v4602_v19  ;;  %vm2218_vm2 = vweird.f32 %v4666_v59 }
 0x25e   : > { %v4702_v3 = vadd.f32 %v4066_v39, %v1775_v11  ;;  %2959 = vpow2.f32 %v2747_v8  ;;  %v4715_v39 = vmul.f32 %v4692_v25, %v4633_v20  ;;  %v2201_v6 = vmul.f32 %v4662_v16, %v2200_v24 }
 0x25f   : > { %v2195_v11 = vor.u32 1.1754944e-38, %v2194_v41  ;;  %vm2263_vm3 = vweird.f32 %v4432_v49  ;;  %v2210_v45 = vor.u32 1.1754944e-38, %v2209_v4  ;;  %v2441_v34 = vadd.f32 %v2440_v44, %v2410_v62 }
 0x260   : > { %v2952_v21 = vpop.eup %2951  ;;  %v2748_v47 = vmul.f32 -1.442695, %v4702_v3  ;;  %v2275_v23 = vsub.f32 1.0, %v4715_v39  ;;  %v2202_v52 = vadd.f32 %v4662_v16, %v2201_v6  ;;  %vm4810_vm5 = vcmp.eq.f32.partialorder %v2252_v37, 8.507059e+37 }
 0x261   : > { %v4711_v13 = vpop.eup %2953  ;;  %v4718_v55 = vadd.f32 1.0, %v2952_v21  ;;  %v2225_v48 = vor.u32 1.1754944e-38, %v2224_v18  ;;  %vm2208_vm7 = vcmp.eq.f32.partialorder %v2207_v61, 8.507059e+37  ;;  %vm2264_vm10 = vweird.f32 %v4625_v42 }
 0x262   : > { %v2214_v53 = vmul.f32 %v4711_v13, %v4666_v59  ;;  %v2956_v26 = vpop.eup %2955  ;;  %vm2219_vm15 = vweird.f32 %v4711_v13  ;;  %v2206_v58 = vsel %vm4781_vm0, %v4662_v16, %v2202_v52  ;;  %v2477_v16 = vld [vmem:[%s5081_s3 + $0x78] sm:$0xff]  ;;  %vm2279_vm14 = vweird.f32 %v4692_v25 }
 0x263   : > { %2961 = vrcp.f32 %v4718_v55  ;;  %v4730_v36 = vpop.eup %2957  ;;  %v4739_v8 = vadd.f32 1.0, %v2956_v26  ;;  %v2196_v26 = vsel %vm4760_vm11, %v2195_v11, %v2191_v29  ;;  %vm4796_vm4 = vmor %vm2218_vm2, %vm2219_vm15  ;;  %v2239_v6 = vand.u32 2147483648, %v4718_v55  ;;  %2479 = vmatpush.msrb.mxu1 %v2477_v16 }
 0x264   : > { %v2215_v46 = vsub.f32 1.0, %v2214_v53  ;;  %v2960_v57 = vpop.eup %2959  ;;  %2963 = vpow2.f32 %v2748_v47  ;;  %v4752_v28 = vmul.f32 %v4730_v36, %v4670_v0  ;;  %v2222_v53 = vand.u32 2147483647, %v4666_v59  ;;  %vm4839_vm15 = vmor %vm2248_vm1, %vm2249_vm12 }
 0x265   : > { %v1777_v27 = vpop.f32.mrf.mxu3  ;;  %v4772_v21 = vadd.f32 1.0, %v2960_v57  ;;  %2965 = vrcp.f32 %v4739_v8  ;;  %v2237_v57 = vand.u32 2147483647, %v4718_v55  ;;  %v2211_v40 = vsel %vm2208_vm7, %v2210_v45, %v2206_v58  ;;  %vm4866_vm12 = vmor %vm2263_vm3, %vm2264_vm10  ;;  %v2473_v58 = vld [vmem:[%s5081_s3 + $0x58] sm:$0xff] }
 0x266   : > { %v2216_v22 = vmul.f32 %v4711_v13, %v2215_v46  ;;  %v4748_v60 = vadd.f32 %v4745_v10, %v1777_v27  ;;  %vm2223_vm8 = vcmp.eq.f32.partialorder %v2222_v53, 8.507059e+37  ;;  %vm2233_vm9 = vweird.f32 %v4718_v55 }
 0x267   : > { %v2240_v52 = vor.u32 1.1754944e-38, %v2239_v6  ;;  %v2290_v44 = vsub.f32 1.0, %v4752_v28  ;;  %vm2238_vm13 = vcmp.eq.f32.partialorder %v2237_v57, 8.507059e+37  ;;  %v2412_v2 = vmul.f32 %v2211_v40, %v4488_v5  ;;  %v2474_v28 = vld [vmem:[%s5081_s3 + $0x60] sm:$0xff] }
 0x268   : > { %v2749_v51 = vmul.f32 -1.442695, %v4748_v60  ;;  %v2217_v12 = vadd.f32 %v4711_v13, %v2216_v22  ;;  %v2476_v22 = vld [vmem:[%s5081_s3 + $0x70] sm:$0xff]  ;;  %v2276_v53 = vmul.f32 %v4692_v25, %v2275_v23  ;;  %vm2268_vm1 = vcmp.eq.f32.partialorder %v2267_v33, 8.507059e+37 }
 0x269   : > { %v2962_v38 = vpop.eup %2961  ;;  %2480 = vmatpush.msrb.mxu1 %v2476_v22  ;;  %v2291_v19 = vmul.f32 %v4730_v36, %v2290_v44  ;;  %v2284_v16 = vand.u32 2147483648, %v4633_v20  ;;  %vm2278_vm0 = vweird.f32 %v4633_v20  ;;  %v2299_v57 = vand.u32 2147483648, %v4670_v0 }
 0x26a   : > { %v2229_v24 = vmul.f32 %v2962_v38, %v4718_v55  ;;  %2967 = vpow2.f32 %v2749_v51  ;;  %v2964_v47 = vpop.eup %2963  ;;  %v2221_v59 = vsel %vm4796_vm4, %v4711_v13, %v2217_v12  ;;  %vm2234_vm6 = vweird.f32 %v2962_v38  ;;  %v2475_v51 = vld [vmem:[%s5081_s3 + $0x68] sm:$0xff]  ;;  %vm4906_vm2 = vmor %vm2278_vm0, %vm2279_vm14 }
 0x26b   : > { %2969 = vrcp.f32 %v4772_v21  ;;  %v2411_v13 = vmul.f32 %v2196_v26, %v4451_v1  ;;  %v4816_v62 = vadd.f32 1.0, %v2964_v47  ;;  %v4821_v37 = vpop.eup %2965  ;;  %v2226_v32 = vsel %vm2223_vm8, %v2225_v48, %v2221_v59  ;;  %vm2235_vm11 = vmor %vm2233_vm9, %vm2234_vm6  ;;  %2481 = vmatpush.msrb.mxu1 %v2475_v51  ;;  %v2471_v48 = vld [vmem:[%s5081_s3 + $0x48] sm:$0xff] }
 0x26c   : > { %v2230_v41 = vsub.f32 1.0, %v2229_v24  ;;  %v2269_v1 = vand.u32 2147483648, %v4432_v49  ;;  %v2262_v12 = vadd.f32 %v4625_v42, %v4721_v56  ;;  %v2413_v61 = vmul.f32 %v2226_v32, %v4589_v15 }
 0x26d   : > { %v2442_v29 = vadd.f32 %v2441_v34, %v2411_v13  ;;  %2971 = vrcp.f32 %v4816_v62  ;;  %v2304_v5 = vmul.f32 %v4821_v37, %v4739_v8  ;;  %2482 = vmatpush.msrb.mxu1 %v2474_v28  ;;  %v2255_v26 = vor.u32 1.1754944e-38, %v2254_v63 }
 0x26e   : > { %v2231_v27 = vmul.f32 %v2962_v38, %v2230_v41  ;;  %v2266_v31 = vsel %vm4866_vm12, %v4625_v42, %v2262_v12  ;;  %v2270_v63 = vor.u32 1.1754944e-38, %v2269_v1  ;;  %v2472_v42 = vld [vmem:[%s5081_s3 + $0x50] sm:$0xff]  ;;  %v2277_v49 = vadd.f32 %v4692_v25, %v2276_v53 }
 0x26f   : > { %2483 = vmatpush.msrb.mxu1 %v2473_v58  ;;  %v2305_v33 = vsub.f32 1.0, %v2304_v5  ;;  %v2292_v32 = vadd.f32 %v4730_v36, %v2291_v19  ;;  %vm2294_vm3 = vweird.f32 %v4730_v36  ;;  %vm2293_vm4 = vweird.f32 %v4670_v0  ;;  %v2465_v19 = vld [vmem:[%s5081_s3 + $0x18] sm:$0xff] }
 0x270   : > { %v2232_v11 = vadd.f32 %v2962_v38, %v2231_v27  ;;  %v2968_v4 = vpop.eup %2967  ;;  %v2271_v6 = vsel %vm2268_vm1, %v2270_v63, %v2266_v31  ;;  %v2282_v27 = vand.u32 2147483647, %v4633_v20  ;;  %v2470_v20 = vld [vmem:[%s5081_s3 + $0x40] sm:$0xff]  ;;  %vm4933_vm6 = vmor %vm2293_vm4, %vm2294_vm3  ;;  %v2300_v24 = vor.u32 1.1754944e-38, %v2299_v57 }
 0x271   : > { %v4833_v18 = vpop.eup %2969  ;;  %v4858_v15 = vadd.f32 1.0, %v2968_v4  ;;  %2484 = vmatpush.msrb.mxu1 %v2472_v42  ;;  %v2306_v4 = vmul.f32 %v4821_v37, %v2305_v33  ;;  %vm2308_vm7 = vweird.f32 %v4739_v8  ;;  %vm2309_vm8 = vweird.f32 %v4821_v37 }
 0x272   : > { %v2236_v55 = vsel %vm2235_vm11, %v2962_v38, %v2232_v11  ;;  %v2251_v38 = vsel %vm4839_vm15, %v4465_v30, %v4705_v7  ;;  %v2443_v7 = vadd.f32 %v2442_v29, %v2412_v2  ;;  %v2319_v45 = vmul.f32 %v4833_v18, %v4772_v21  ;;  %v2467_v30 = vld [vmem:[%s5081_s3 + $0x28] sm:$0xff]  ;;  %vm4969_vm11 = vmor %vm2308_vm7, %vm2309_vm8 }
 0x273   : > { %v2241_v56 = vsel %vm2238_vm13, %v2240_v52, %v2236_v55  ;;  %2973 = vrcp.f32 %v4858_v15  ;;  %v4894_v34 = vpop.eup %2971  ;;  %2485 = vmatpush.msrb.mxu1 %v2471_v48  ;;  %v2416_v11 = vmul.f32 %v2271_v6, %v4315_v54  ;;  %v2285_v52 = vor.u32 1.1754944e-38, %v2284_v16  ;;  %v2469_v54 = vld [vmem:[%s5081_s3 + $0x38] sm:$0xff]  ;;  %v2464_v6 = vld [vmem:[%s5081_s3 + $0x10] sm:$0xff] }
 0x274   : > { %v1780_v47 = vpop.f32.mrf.mxu3  ;;  %v2414_v39 = vmul.f32 %v2241_v56, %v4648_v17  ;;  %v2256_v17 = vsel %vm4810_vm5, %v2255_v26, %v2251_v38  ;;  %v2444_v41 = vadd.f32 %v2443_v7, %v2413_v61  ;;  %v2320_v13 = vsub.f32 1.0, %v2319_v45  ;;  %v2468_v38 = vld [vmem:[%s5081_s3 + $0x30] sm:$0xff]  ;;  %v2466_v7 = vld [vmem:[%s5081_s3 + $0x20] sm:$0xff] }
 0x275   : > { %v4872_v23 = vadd.f32 %v4745_v10, %v1780_v47  ;;  %v2415_v22 = vmul.f32 %v2256_v17, %v4273_v35  ;;  %v2281_v35 = vsel %vm4906_vm2, %v4692_v25, %v2277_v49  ;;  %v2334_v1 = vmul.f32 %v4894_v34, %v4816_v62  ;;  %2486 = vmatpush.msrb.mxu1 %v2470_v20 }
 0x276   : > { %v2445_v46 = vadd.f32 %v2444_v41, %v2414_v39  ;;  %vm2283_vm5 = vcmp.eq.f32.partialorder %v2282_v27, 8.507059e+37  ;;  %v2297_v55 = vand.u32 2147483647, %v4670_v0  ;;  %v2321_v2 = vmul.f32 %v4833_v18, %v2320_v13  ;;  %v2463_v27 = vld [vmem:[%s5081_s3 + $0x8] sm:$0xff] }
 0x277   : > { %v2750_v59 = vmul.f32 -1.442695, %v4872_v23  ;;  %2487 = vmatpush.msrb.mxu1 %v2469_v54  ;;  %v2286_v61 = vsel %vm2283_vm5, %v2285_v52, %v2281_v35  ;;  %v2296_v56 = vsel %vm4933_vm6, %v4730_v36, %v2292_v32  ;;  %v2307_v0 = vadd.f32 %v4821_v37, %v2306_v4 }
 0x278   : > { %v2446_v51 = vadd.f32 %v2445_v46, %v2415_v22  ;;  %v2335_v53 = vsub.f32 1.0, %v2334_v1  ;;  %v2314_v47 = vand.u32 2147483648, %v4739_v8  ;;  %v2312_v39 = vand.u32 2147483647, %v4739_v8 }
 0x279   : > { %2975 = vpow2.f32 %v2750_v59  ;;  %v4929_v44 = vpop.eup %2973  ;;  %2488 = vmatpush.msrb.mxu1 %v2468_v38  ;;  %v2322_v58 = vadd.f32 %v4833_v18, %v2321_v2  ;;  %vm2324_vm9 = vweird.f32 %v4833_v18  ;;  %v2417_v31 = vmul.f32 %v2286_v61, %v4456_v14 }
 0x27a   : > { %v2447_v26 = vadd.f32 %v2446_v51, %v2416_v11  ;;  %v2349_v36 = vmul.f32 %v4929_v44, %v4858_v15  ;;  %vm2298_vm10 = vcmp.eq.f32.partialorder %v2297_v55, 8.507059e+37  ;;  %v2327_v45 = vand.u32 2147483647, %v4772_v21  ;;  %v2462_v11 = vld [vmem:[%s5081_s3] sm:$0xff] }
 0x27b   : > { %2489 = vmatpush.msrb.mxu1 %v2467_v30  ;;  %v2329_v17 = vand.u32 2147483648, %v4772_v21  ;;  %v2301_v41 = vsel %vm2298_vm10, %v2300_v24, %v2296_v56  ;;  %v2311_v14 = vsel %vm4969_vm11, %v4821_v37, %v2307_v0  ;;  %vm2323_vm13 = vweird.f32 %v4772_v21 }
 0x27c   : > { %v1782_v29 = vpop.f32.mrf.mxu3  ;;  %v2336_v8 = vmul.f32 %v4894_v34, %v2335_v53  ;;  %v2315_v59 = vor.u32 1.1754944e-38, %v2314_v47  ;;  %vm4985_vm15 = vmor %vm2323_vm13, %vm2324_vm9  ;;  %v2448_v49 = vadd.f32 %v2447_v26, %v2417_v31  ;;  %v2350_v33 = vsub.f32 1.0, %v2349_v36 }
 0x27d   : > { %v4924_v12 = vadd.f32 %v4745_v10, %v1782_v29  ;;  %2490 = vmatpush.msrb.mxu1 %v2466_v7  ;;  %vm2313_vm12 = vcmp.eq.f32.partialorder %v2312_v39, 8.507059e+37  ;;  %v2326_v21 = vsel %vm4985_vm15, %v4833_v18, %v2322_v58  ;;  %v2418_v16 = vmul.f32 %v2301_v41, %v4508_v43 }
 0x27e   : > { %v2316_v46 = vsel %vm2313_vm12, %v2315_v59, %v2311_v14  ;;  %vm2328_vm1 = vcmp.eq.f32.partialorder %v2327_v45, 8.507059e+37  ;;  %v2330_v48 = vor.u32 1.1754944e-38, %v2329_v17  ;;  %v2337_v13 = vadd.f32 %v4894_v34, %v2336_v8 }
 0x27f   : > { %v2976_v10 = vpop.eup %2975  ;;  %v2751_v28 = vmul.f32 -1.442695, %v4924_v12  ;;  %2491 = vmatpush.msrb.mxu1 %v2465_v19  ;;  %vm2339_vm14 = vweird.f32 %v4894_v34  ;;  %v2342_v22 = vand.u32 2147483647, %v4816_v62  ;;  %v2449_v32 = vadd.f32 %v2448_v49, %v2418_v16 }
 0x280   : > { %v4949_v5 = vadd.f32 1.0, %v2976_v10  ;;  %v2331_v18 = vsel %vm2328_vm1, %v2330_v48, %v2326_v21  ;;  %v2351_v43 = vmul.f32 %v4929_v44, %v2350_v33  ;;  %vm2338_vm0 = vweird.f32 %v4816_v62 }
 0x281   : > { %2977 = vpow2.f32 %v2751_v28  ;;  %2492 = vmatpush.msrb.mxu1 %v2464_v6  ;;  %v2344_v35 = vand.u32 2147483648, %v4816_v62  ;;  %v2419_v4 = vmul.f32 %v2316_v46, %v4640_v50  ;;  %vm5010_vm2 = vmor %vm2338_vm0, %vm2339_vm14  ;;  %v2420_v52 = vmul.f32 %v2331_v18, %v4659_v9 }
 0x282   : > { %2979 = vrcp.f32 %v4949_v5  ;;  %v2341_v51 = vsel %vm5010_vm2, %v4894_v34, %v2337_v13  ;;  %vm5018_vm3 = vcmp.eq.f32.partialorder %v2342_v22, 8.507059e+37  ;;  %vm2354_vm4 = vweird.f32 %v4929_v44 }
 0x283   : > { %2493 = vmatpush.msrb.mxu1 %v2463_v27  ;;  %v2450_v62 = vadd.f32 %v2449_v32, %v2419_v4  ;;  %v2352_v50 = vadd.f32 %v4929_v44, %v2351_v43  ;;  %v2345_v55 = vor.u32 1.1754944e-38, %v2344_v35  ;;  %vm2353_vm6 = vweird.f32 %v4858_v15 }
 0x284   : > { %v2359_v9 = vand.u32 2147483648, %v4858_v15  ;;  %v2374_v24 = vand.u32 2147483648, %v4949_v5  ;;  %vm5027_vm7 = vmor %vm2353_vm6, %vm2354_vm4  ;;  %v2357_v2 = vand.u32 2147483647, %v4858_v15  ;;  %vm2368_vm8 = vweird.f32 %v4949_v5 }
 0x285   : > { %2494 = vmatpush.msrb.mxu1 %v2462_v11  ;;  %v2372_v61 = vand.u32 2147483647, %v4949_v5  ;;  %v2346_v28 = vsel %vm5018_vm3, %v2345_v55, %v2341_v51  ;;  %v2451_v38 = vadd.f32 %v2450_v62, %v2420_v52  ;;  %v2356_v0 = vsel %vm5027_vm7, %v4929_v44, %v2352_v50 }
 0x286   : > { %v2360_v26 = vor.u32 1.1754944e-38, %v2359_v9  ;;  %v2375_v36 = vor.u32 1.1754944e-38, %v2374_v24  ;;  %v2421_v15 = vmul.f32 %v2346_v28, %v4702_v3  ;;  %vm2358_vm10 = vcmp.eq.f32.partialorder %v2357_v2, 8.507059e+37 }
 0x287   : > { %v2978_v37 = vpop.eup %2977  ;;  %vm2373_vm11 = vcmp.eq.f32.partialorder %v2372_v61, 8.507059e+37 }
 0x288   : > { %v2980_v57 = vpop.eup %2979  ;;  %v1912_v40 = vadd.f32 1.0, %v2978_v37  ;;  %v2452_v58 = vadd.f32 %v2451_v38, %v2421_v15 }
 0x289   : > { %v2364_v20 = vmul.f32 %v2980_v57, %v4949_v5  ;;  %vm2369_vm5 = vweird.f32 %v2980_v57  ;;  %v2361_v5 = vsel %vm2358_vm10, %v2360_v26, %v2356_v0 }
 0x28a   : > { %2981 = vrcp.f32 %v1912_v40  ;;  %vm2370_vm9 = vmor %vm2368_vm8, %vm2369_vm5  ;;  %v2389_v39 = vand.u32 2147483648, %v1912_v40  ;;  %v2387_v63 = vand.u32 2147483647, %v1912_v40  ;;  %v2422_v45 = vmul.f32 %v2361_v5, %v4748_v60 }
 0x28b   : > { %v2365_v29 = vsub.f32 1.0, %v2364_v20  ;;  %vm2383_vm15 = vweird.f32 %v1912_v40 }
 0x28c   : > { %v2390_v19 = vor.u32 1.1754944e-38, %v2389_v39  ;;  %v2453_v3 = vadd.f32 %v2452_v58, %v2422_v45  ;;  %vm2388_vm1 = vcmp.eq.f32.partialorder %v2387_v63, 8.507059e+37 }
 0x28d   : > { %v2366_v25 = vmul.f32 %v2980_v57, %v2365_v29 }
 0x28f   : > { %v2367_v10 = vadd.f32 %v2980_v57, %v2366_v25 }
 0x290   : > { %v2982_v56 = vpop.eup %2981 }
 0x291   : > { %v2371_v53 = vsel %vm2370_vm9, %v2980_v57, %v2367_v10  ;;  %v2379_v47 = vmul.f32 %v2982_v56, %v1912_v40  ;;  %vm2384_vm13 = vweird.f32 %v2982_v56 }
 0x292   : > { %v2376_v7 = vsel %vm2373_vm11, %v2375_v36, %v2371_v53  ;;  %vm2385_vm12 = vmor %vm2383_vm15, %vm2384_vm13 }
 0x293   : > { %v2380_v30 = vsub.f32 1.0, %v2379_v47  ;;  %v2423_v44 = vmul.f32 %v2376_v7, %v4872_v23 }
 0x295   : > { %v2381_v31 = vmul.f32 %v2982_v56, %v2380_v30  ;;  %v2454_v8 = vadd.f32 %v2453_v3, %v2423_v44 }
 0x297   : > { %v2382_v17 = vadd.f32 %v2982_v56, %v2381_v31 }
 0x299   : > { %v2386_v41 = vsel %vm2385_vm12, %v2982_v56, %v2382_v17 }
 0x29a   : > { %v2391_v14 = vsel %vm2388_vm1, %v2390_v19, %v2386_v41 }
 0x29b   : > { %v2424_v59 = vmul.f32 %v2391_v14, %v4924_v12  ;;  %v2478_v12 = vld [vmem:[%s5082_s4] sm:$0x1] }
 0x29d   : > { %v2455_v42 = vadd.f32 %v2454_v8, %v2424_v59 }
 0x29f   : > { %v2456_v49 = vrot.slane %v2455_v42, 4 }
 0x2a1   : > { %v2457_v33 = vadd.f32 %v2456_v49, %v2455_v42 }
 0x2a3   : > { %v2458_v6 = vrot.slane %v2457_v33, 2 }
 0x2a5   : > { %v2459_v60 = vadd.f32 %v2458_v6, %v2457_v33 }
 0x2a7   : > { %v2460_v21 = vrot.slane %v2459_v60, 1 }
 0x2a9   : > { %v2461_v23 = vadd.f32 %v2460_v21, %v2459_v60 }
 0x2ab   : > { %2495 = vmatmul.f32.vlgmr.msrb.gmra.mxu1 %v2461_v23 }
 0x328   : > { %v2496_v37 = vpop.f32.mrf.mxu1 }
 0x329   : > { %v2497_v16 = vadd.f32 %v2496_v37, %v2478_v12 }
 0x32b   : > { %v2499_v46 = vperm.slane %v2497_v16, 0 }
 0x32d   : > { %2500 = vst [vmem:[%s217_s7] sm:$0xff] %v2499_v46 }
 0x32e   : > { %3019 = shalt.err (!%p3016_p3)
}
 0x32f   : > { %2807 = dma.vmem_to_hbm [thread:$0]  (%p3132_p5), %s2515_s8, 128, %s2517_s23, %s2502_s25  }
 0x330 PF: > { %p2813_p4 = scmp.ge.s32.totalorder %s3054_s21, 2  ;;  %s2528_s13 = sand.u32 1, %s3042_s18  }
 0x331   : > { %s2529_s16 = scalar_lea.sflag [#allocation3], %s2528_s13 }
 0x332   : > { %p2810_p7 = pnand %p2813_p4, %p3136_p6 }
 0x334   : > { %p2811_p8 = pneg %p2810_p7 }
 0x336   : > { %3037 = dma.done.wait (%p2811_p8), %s2529_s16, 128  }
 0x337   : > { %3039 = vsyncadd (%p2811_p8), %s2529_s16, 4294967168  ;;  %p15_p9 = scmp.ge.s32.totalorder %s3119_s24, 4   ;;  %s5162_s18 = smov %s3046_s19 }
 0x338   : > { %s5163_s19 = smov %s3050_s20  ;;  %s5164_s20 = smov %s3130_s27 }
 0x339   : > { %s5165_s21 = smov %s3119_s24  ;;  %17 = sbr.rel (!%p15_p9) target bundleno = 3 (0x3), region = 75 }
 0x33e   :  { %2535 = vsyncpa [#allocation3], 1 }
 0x33f   :  { %2537 = vsyncpa [#allocation3 + $0x1], 1 }

</bundles_post_ra>
